<compile_context>
chip_gen: v7x
topology: tpu7x:2x2x1
jax: 0.10.0
libtpu: 0.0.40
codegen_flags: <defaults>
</compile_context>

<pallas_src>
import jax
import jax.numpy as jnp
from jax.experimental import pallas as pl
from jax.experimental.pallas import tpu as pltpu

_LANES = 128
# Worst case (f32) per buffer set: (1 in + 5 outs) * 4B + 3 masks * 1B = 27 B/elem
# -> ~3.4 MiB at 1024x128, ~6.8 MiB double-buffered.  2048-row tiles would gain
# ~1% on v6e/v7x but bust v5e's 16 MiB scoped budget, so keep one portable size.
_MAX_TILE_ROWS = 1024
# Below this, launch/wrapper overhead dominates; fused XLA elementwise wins.
_FALLBACK_ELEMS = 64 * 1024

_MASK_DTYPE = None  # resolved lazily by _mask_dtype()


def _round_up(v, m):
    return ((v + m - 1) // m) * m


def _reference_forward(x):
    # Plain-jnp path: tiny tensors (overhead-dominated) and non-float dtypes
    # (jnp's `x / 2` true division matches torch.div's integer semantics).
    return (x + 5, x - 3, x * 2, x / 2, x ** 2, x > 2, x < 5, x == 3)


def _mask_dtype():
    """Prefer writing boolean masks straight from the kernel (3 B/elem); probe
    once and fall back to int8 0/1 + wrapper cast if bool memrefs are not
    supported by the installed Pallas/Mosaic."""
    global _MASK_DTYPE
    if _MASK_DTYPE is None:
        def probe_kernel(x_ref, o_ref):
            o_ref[...] = x_ref[...] > 0.0

        try:
            x_probe = jnp.concatenate(
                [jnp.full((4, _LANES), -1.0, jnp.float32),
                 jnp.full((4, _LANES), 1.0, jnp.float32)])
            out = pl.pallas_call(
                probe_kernel,
                out_shape=jax.ShapeDtypeStruct((8, _LANES), jnp.bool_),
            )(x_probe)
            ok = bool(jnp.all(out == (x_probe > 0.0)))
            _MASK_DTYPE = jnp.bool_ if ok else jnp.int8
        except Exception:
            _MASK_DTYPE = jnp.int8
    return _MASK_DTYPE


def _elementwise_kernel(x_ref, add_ref, sub_ref, mul_ref, div_ref, pow_ref,
                        gt_ref, lt_ref, eq_ref):
    # Up-cast once to f32 for the VPU (v5e has no bf16 ALUs); store each result
    # in its native output dtype — the binding resource is the vst/DMA path, so
    # the extra converts are free filler.
    xf = x_ref[...].astype(jnp.float32)
    val_dt = add_ref.dtype
    add_ref[...] = (xf + 5.0).astype(val_dt)
    sub_ref[...] = (xf - 3.0).astype(val_dt)
    mul_ref[...] = (xf * 2.0).astype(val_dt)
    div_ref[...] = (xf * 0.5).astype(val_dt)
    pow_ref[...] = (xf * xf).astype(val_dt)
    gt_ref[...] = (xf > 2.0).astype(gt_ref.dtype)
    lt_ref[...] = (xf < 5.0).astype(lt_ref.dtype)
    eq_ref[...] = (xf == 3.0).astype(eq_ref.dtype)


def pt_module_forward(x):
    """Replicates PtModule.forward on an NCHW tensor."""
    orig_shape = x.shape
    orig_dtype = x.dtype
    n_elem = x.size

    if (n_elem < _FALLBACK_ELEMS
            or not jnp.issubdtype(orig_dtype, jnp.floating)
            or jnp.dtype(orig_dtype).itemsize > 4):
        # TODO(synk): 64-bit floats (rare on TPU) also take the jnp path so the
        # kernel's f32 compute never silently loses precision.
        return _reference_forward(x)

    # Lane-dense (rows, 128) view with minimal padding.  When numel % 128 == 0
    # (the common NCHW case) every reshape here and below is a pure view.
    rows = pl.cdiv(n_elem, _LANES)
    padded = rows * _LANES
    x_flat = jnp.reshape(x, (-1,))
    if padded != n_elem:
        x_flat = jnp.pad(x_flat, (0, padded - n_elem))
    x2d = jnp.reshape(x_flat, (rows, _LANES))

    # Always split into >=2 grid steps so both v7x TensorCores get work; keep
    # tiles 32-row aligned so the narrow (int8/bool) stores stay unmasked
    # except at the ragged tail, which Pallas handles with masked edge stores.
    tile_rows = min(_MAX_TILE_ROWS, _round_up(pl.cdiv(rows, 2), 32))
    grid = (pl.cdiv(rows, tile_rows),)
    spec = pl.BlockSpec((tile_rows, _LANES), lambda i: (i, 0))

    mask_dtype = _mask_dtype()
    val = jax.ShapeDtypeStruct((rows, _LANES), orig_dtype)
    msk = jax.ShapeDtypeStruct((rows, _LANES), mask_dtype)

    itemsize = jnp.dtype(orig_dtype).itemsize
    cost = pl.CostEstimate(
        flops=8 * padded,
        transcendentals=0,
        bytes_accessed=padded * (6 * itemsize + 3),
    )

    outs = pl.pallas_call(
        _elementwise_kernel,
        out_shape=(val,) * 5 + (msk,) * 3,
        grid_spec=pltpu.PrefetchScalarGridSpec(
            num_scalar_prefetch=0,
            grid=grid,
            in_specs=[spec],
            out_specs=(spec,) * 8,
        ),
        compiler_params=pltpu.CompilerParams(
            dimension_semantics=("parallel",),
            vmem_limit_bytes=32 * 1024 * 1024,
        ),
        cost_estimate=cost,
    )(x2d)

    def _unflatten(a, want_dtype):
        if padded != n_elem:              # uncommon ragged case only
            a = jnp.reshape(a, (-1,))[:n_elem]
        a = jnp.reshape(a, orig_shape)
        return a if a.dtype == want_dtype else a.astype(want_dtype)

    vals = [_unflatten(o, orig_dtype) for o in outs[:5]]
    masks = [_unflatten(o, jnp.bool_) for o in outs[5:]]
    return (*vals, *masks)


def _check(x, rtol=1e-6, atol=1e-6):
    results = pt_module_forward(x)
    jax.block_until_ready(results)
    ref = (x + 5, x - 3, x * 2, x / 2, x ** 2, x > 2, x < 5, x == 3)
    for got, want in zip(results, ref):
        assert got.dtype == want.dtype, (got.dtype, want.dtype)
        assert got.shape == want.shape, (got.shape, want.shape)
        assert jnp.allclose(got.astype(jnp.float32), want.astype(jnp.float32),
                            rtol=rtol, atol=atol), "value mismatch"


if __name__ == "__main__":
    key = jax.random.PRNGKey(0)
    k0, k1, k2 = jax.random.split(key, 3)

    # Small NCHW input consistent with the module (plain-jnp fast path).
    x_small = jax.random.uniform(k0, (2, 4, 16, 16), jnp.float32, 0.0, 8.0)
    x_small = x_small.at[0, 0, 0, :4].set(3.0)
    _check(x_small)

    # 128-aligned f32 input: exercises the Pallas kernel with a copy-free
    # wrapper and a 2-tile grid (both v7x TensorCores busy).
    x_big = jax.random.uniform(k1, (4, 8, 64, 64), jnp.float32, 0.0, 8.0)
    x_big = x_big.at[0, 0, 0, :8].set(3.0)
    _check(x_big)

    # Ragged bf16 input: exercises native narrow-dtype I/O plus the padded path.
    x_bf16 = jax.random.uniform(k2, (3, 7, 60, 60), jnp.bfloat16, 0.0, 8.0)
    x_bf16 = x_bf16.at[0, 0, 0, :8].set(3.0)
    _check(x_bf16, rtol=2e-2, atol=2e-2)

    print("KERNEL_OK")
</pallas_src>

<mosaic_0001>
module attributes {stable_mosaic.version = 11 : i64} {
  func.func @probe_kernel(%arg0: memref<8x128xf32, #tpu.memory_space<vmem>>, %arg1: memref<8x128xi32, #tpu.memory_space<vmem>>) attributes {dimension_semantics = [], scalar_prefetch = 0 : i64, scratch_operands = 0 : i64, tpu.core_type = #tpu.core_type<tc>} {
    %c0 = arith.constant 0 : index
    %c0_0 = arith.constant 0 : index
    %0 = vector.load %arg0[%c0, %c0_0] : memref<8x128xf32, #tpu.memory_space<vmem>>, vector<8x128xf32>
    %cst = arith.constant 0.000000e+00 : f32
    %1 = vector.broadcast %cst : f32 to vector<8x128xf32>
    %2 = arith.cmpf ogt, %0, %1 : vector<8x128xf32>
    %c0_1 = arith.constant 0 : index
    %c0_2 = arith.constant 0 : index
    %3 = vector.load %arg1[%c0_1, %c0_2] : memref<8x128xi32, #tpu.memory_space<vmem>>, vector<8x128xi32>
    %4 = arith.extui %2 : vector<8x128xi1> to vector<8x128xi32>
    %cst_3 = arith.constant dense<0> : vector<8x128xi32>
    %5 = arith.cmpi ne, %3, %cst_3 : vector<8x128xi32>
    tpu.vector_store %arg1[%c0_1, %c0_2], %4 {strides = array<i32>} : memref<8x128xi32, #tpu.memory_space<vmem>>, vector<8x128xi32>,
    return
  }
}

module attributes {stable_mosaic.version = 11 : i64} {
  func.func @_elementwise_kernel(%arg0: i32, %arg1: memref<512x128xf32, #tpu.memory_space<vmem>>, %arg2: memref<512x128xf32, #tpu.memory_space<vmem>>, %arg3: memref<512x128xf32, #tpu.memory_space<vmem>>, %arg4: memref<512x128xf32, #tpu.memory_space<vmem>>, %arg5: memref<512x128xf32, #tpu.memory_space<vmem>>, %arg6: memref<512x128xf32, #tpu.memory_space<vmem>>, %arg7: memref<512x128xi8, #tpu.memory_space<vmem>>, %arg8: memref<512x128xi8, #tpu.memory_space<vmem>>, %arg9: memref<512x128xi8, #tpu.memory_space<vmem>>) attributes {dimension_semantics = [#tpu.dimension_semantics<parallel>], iteration_bounds = array<i64: 2>, scalar_prefetch = 0 : i64, scratch_operands = 0 : i64, tpu.core_type = #tpu.core_type<tc>, window_params = [{transform_indices = @transform_0, window_bounds = array<i64: 512, 128>}, {transform_indices = @transform_1, window_bounds = array<i64: 512, 128>}, {transform_indices = @transform_2, window_bounds = array<i64: 512, 128>}, {transform_indices = @transform_3, window_bounds = array<i64: 512, 128>}, {transform_indices = @transform_4, window_bounds = array<i64: 512, 128>}, {transform_indices = @transform_5, window_bounds = array<i64: 512, 128>}, {transform_indices = @transform_6, window_bounds = array<i64: 512, 128>}, {transform_indices = @transform_7, window_bounds = array<i64: 512, 128>}, {transform_indices = @transform_8, window_bounds = array<i64: 512, 128>}]} {
    %c0 = arith.constant 0 : index
    %c0_0 = arith.constant 0 : index
    %0 = vector.load %arg1[%c0, %c0_0] : memref<512x128xf32, #tpu.memory_space<vmem>>, vector<512x128xf32>
    %cst = arith.constant 5.000000e+00 : f32
    %1 = vector.broadcast %cst : f32 to vector<512x128xf32>
    %2 = arith.addf %0, %1 : vector<512x128xf32>
    %c0_1 = arith.constant 0 : index
    %c0_2 = arith.constant 0 : index
    %3 = vector.load %arg2[%c0_1, %c0_2] : memref<512x128xf32, #tpu.memory_space<vmem>>, vector<512x128xf32>
    tpu.vector_store %arg2[%c0_1, %c0_2], %2 {strides = array<i32>} : memref<512x128xf32, #tpu.memory_space<vmem>>, vector<512x128xf32>,
    %cst_3 = arith.constant 3.000000e+00 : f32
    %4 = vector.broadcast %cst_3 : f32 to vector<512x128xf32>
    %5 = arith.subf %0, %4 : vector<512x128xf32>
    %c0_4 = arith.constant 0 : index
    %c0_5 = arith.constant 0 : index
    %6 = vector.load %arg3[%c0_4, %c0_5] : memref<512x128xf32, #tpu.memory_space<vmem>>, vector<512x128xf32>
    tpu.vector_store %arg3[%c0_4, %c0_5], %5 {strides = array<i32>} : memref<512x128xf32, #tpu.memory_space<vmem>>, vector<512x128xf32>,
    %cst_6 = arith.constant 2.000000e+00 : f32
    %7 = vector.broadcast %cst_6 : f32 to vector<512x128xf32>
    %8 = arith.mulf %0, %7 : vector<512x128xf32>
    %c0_7 = arith.constant 0 : index
    %c0_8 = arith.constant 0 : index
    %9 = vector.load %arg4[%c0_7, %c0_8] : memref<512x128xf32, #tpu.memory_space<vmem>>, vector<512x128xf32>
    tpu.vector_store %arg4[%c0_7, %c0_8], %8 {strides = array<i32>} : memref<512x128xf32, #tpu.memory_space<vmem>>, vector<512x128xf32>,
    %cst_9 = arith.constant 5.000000e-01 : f32
    %10 = vector.broadcast %cst_9 : f32 to vector<512x128xf32>
    %11 = arith.mulf %0, %10 : vector<512x128xf32>
    %c0_10 = arith.constant 0 : index
    %c0_11 = arith.constant 0 : index
    %12 = vector.load %arg5[%c0_10, %c0_11] : memref<512x128xf32, #tpu.memory_space<vmem>>, vector<512x128xf32>
    tpu.vector_store %arg5[%c0_10, %c0_11], %11 {strides = array<i32>} : memref<512x128xf32, #tpu.memory_space<vmem>>, vector<512x128xf32>,
    %13 = arith.mulf %0, %0 : vector<512x128xf32>
    %c0_12 = arith.constant 0 : index
    %c0_13 = arith.constant 0 : index
    %14 = vector.load %arg6[%c0_12, %c0_13] : memref<512x128xf32, #tpu.memory_space<vmem>>, vector<512x128xf32>
    tpu.vector_store %arg6[%c0_12, %c0_13], %13 {strides = array<i32>} : memref<512x128xf32, #tpu.memory_space<vmem>>, vector<512x128xf32>,
    %cst_14 = arith.constant 2.000000e+00 : f32
    %15 = vector.broadcast %cst_14 : f32 to vector<512x128xf32>
    %16 = arith.cmpf ogt, %0, %15 : vector<512x128xf32>
    %17 = arith.extui %16 : vector<512x128xi1> to vector<512x128xi8>
    %c0_15 = arith.constant 0 : index
    %c0_16 = arith.constant 0 : index
    %18 = vector.load %arg7[%c0_15, %c0_16] : memref<512x128xi8, #tpu.memory_space<vmem>>, vector<512x128xi8>
    tpu.vector_store %arg7[%c0_15, %c0_16], %17 {strides = array<i32>} : memref<512x128xi8, #tpu.memory_space<vmem>>, vector<512x128xi8>,
    %cst_17 = arith.constant 5.000000e+00 : f32
    %19 = vector.broadcast %cst_17 : f32 to vector<512x128xf32>
    %20 = arith.cmpf olt, %0, %19 : vector<512x128xf32>
    %21 = arith.extui %20 : vector<512x128xi1> to vector<512x128xi8>
    %c0_18 = arith.constant 0 : index
    %c0_19 = arith.constant 0 : index
    %22 = vector.load %arg8[%c0_18, %c0_19] : memref<512x128xi8, #tpu.memory_space<vmem>>, vector<512x128xi8>
    tpu.vector_store %arg8[%c0_18, %c0_19], %21 {strides = array<i32>} : memref<512x128xi8, #tpu.memory_space<vmem>>, vector<512x128xi8>,
    %cst_20 = arith.constant 3.000000e+00 : f32
    %23 = vector.broadcast %cst_20 : f32 to vector<512x128xf32>
    %24 = arith.cmpf oeq, %0, %23 : vector<512x128xf32>
    %25 = arith.extui %24 : vector<512x128xi1> to vector<512x128xi8>
    %c0_21 = arith.constant 0 : index
    %c0_22 = arith.constant 0 : index
    %26 = vector.load %arg9[%c0_21, %c0_22] : memref<512x128xi8, #tpu.memory_space<vmem>>, vector<512x128xi8>
    tpu.vector_store %arg9[%c0_21, %c0_22], %25 {strides = array<i32>} : memref<512x128xi8, #tpu.memory_space<vmem>>, vector<512x128xi8>,
    return
  }
  func.func @transform_0(%arg0: i32) -> (i32, i32) {
    %c0_i32 = arith.constant 0 : i32
    %c0_i32_0 = arith.constant 0 : i32
    return %arg0, %c0_i32 : i32, i32
  }
  func.func @transform_1(%arg0: i32) -> (i32, i32) {
    %c0_i32 = arith.constant 0 : i32
    %c0_i32_0 = arith.constant 0 : i32
    return %arg0, %c0_i32 : i32, i32
  }
  func.func @transform_2(%arg0: i32) -> (i32, i32) {
    %c0_i32 = arith.constant 0 : i32
    %c0_i32_0 = arith.constant 0 : i32
    return %arg0, %c0_i32 : i32, i32
  }
  func.func @transform_3(%arg0: i32) -> (i32, i32) {
    %c0_i32 = arith.constant 0 : i32
    %c0_i32_0 = arith.constant 0 : i32
    return %arg0, %c0_i32 : i32, i32
  }
  func.func @transform_4(%arg0: i32) -> (i32, i32) {
    %c0_i32 = arith.constant 0 : i32
    %c0_i32_0 = arith.constant 0 : i32
    return %arg0, %c0_i32 : i32, i32
  }
  func.func @transform_5(%arg0: i32) -> (i32, i32) {
    %c0_i32 = arith.constant 0 : i32
    %c0_i32_0 = arith.constant 0 : i32
    return %arg0, %c0_i32 : i32, i32
  }
  func.func @transform_6(%arg0: i32) -> (i32, i32) {
    %c0_i32 = arith.constant 0 : i32
    %c0_i32_0 = arith.constant 0 : i32
    return %arg0, %c0_i32 : i32, i32
  }
  func.func @transform_7(%arg0: i32) -> (i32, i32) {
    %c0_i32 = arith.constant 0 : i32
    %c0_i32_0 = arith.constant 0 : i32
    return %arg0, %c0_i32 : i32, i32
  }
  func.func @transform_8(%arg0: i32) -> (i32, i32) {
    %c0_i32 = arith.constant 0 : i32
    %c0_i32_0 = arith.constant 0 : i32
    return %arg0, %c0_i32 : i32, i32
  }
}

</mosaic_0001>

<bundles_post_ra>
// kernel: tpu_custom_call.1
= control target key start
LH: loop header
LB: loop body
LE: loop exit
PB: predicated region body
PF: predicated region fallthrough
CT: control target
= control target key end

     0   :  { %6 = vsyncpa [#allocation3], 0  ;;  %s55_s6 = smov [#allocation2]   ;;  %s82_s0 = inlined_call_operand.hbm [shape: f32[8,128], index: 0, kind: input, shape index: {}]   ;;  %s83_s1 = inlined_call_operand.vmem [shape: s32[8,128], index: 1, kind: output, shape index: {}]  }
   0x1   :  { %s13_s7 = sshll.u32 %s55_s6, 4  ;;  %s31_s10 = scalar_lea.hbm %s82_s0, 128  ;;  %s14_s7 = int_to_ptr.vmem [resolvable:$true] %s13_s7 }
   0x2   :  { %p32_p0 = scmp.ne.s32.totalorder %s82_s0, %s31_s10  ;;  %p35_p1 = scmp.lt.u32.totalorder %s31_s10, %s82_s0 }
   0x4   :  { %p37_p2 = pnand %p35_p1, %p32_p0 }
   0x6   :  { %40 = shalt.err (!%p37_p2)
}
   0x7   :  { %s41_s15 = scalar_lea.vmem %s14_s7, 128  ;;  %p46_p4 = scmp.lt.s32.totalorder %s14_s7, %s14_s7 }
   0x8   :  { %p42_p3 = scmp.ne.s32.totalorder %s14_s7, %s41_s15  ;;  %p47_p5 = scmp.lt.s32.totalorder %s41_s15, %s41_s15 }
   0xa   :  { %p48_p6 = por %p47_p5, %p46_p4 }
   0xc   :  { %p49_p7 = pnand %p48_p6, %p42_p3 }
   0xe   :  { %52 = shalt.err (!%p49_p7)
}
   0xf   :  { %16 = dma.hbm_to_vmem [thread:$0]  %s82_s0, 128, %s14_s7, [#allocation3]  }
  0x10   :  { %53 = dma.done.wait [#allocation3], 128  }
  0x11   :  { %54 = vsyncadd [#allocation3], 4294967168  ;;  %v20_v0 = vld [vmem:[#allocation2] sm:$0xff]  ;;  %v56_v1 = vmov 0  }
  0x12   :  { %vm21_vm0 = vcmp.gt.f32.partialorder %v20_v0, 0.0 }
  0x13   :  { %v22_v2 = vsel %vm21_vm0, 1, %v56_v1 }
  0x14   :  { %23 = vst [vmem:[%s83_s1] sm:$0xff] %v22_v2 }
  0x15   :  { %28 = vsyncpa [#allocation3], 1 }

// kernel: tpu_custom_call.1
= control target key start
LH: loop header
LB: loop body
LE: loop exit
PB: predicated region body
PF: predicated region fallthrough
CT: control target
= control target key end

     0   :  { %s4750_s0 = inlined_call_operand.hbm [shape: f32[1024,128], index: 0, kind: input, shape index: {}]   ;;  %s4751_s1 = inlined_call_operand.hbm [shape: f32[1024,128], index: 1, kind: output, shape index: {0}]   ;;  %s4752_s2 = inlined_call_operand.hbm [shape: f32[1024,128], index: 2, kind: output, shape index: {1}]   ;;  %s4753_s3 = inlined_call_operand.hbm [shape: f32[1024,128], index: 3, kind: output, shape index: {2}]   ;;  %s4754_s4 = inlined_call_operand.hbm [shape: f32[1024,128], index: 4, kind: output, shape index: {3}]   ;;  %s4755_s5 = inlined_call_operand.hbm [shape: f32[1024,128], index: 5, kind: output, shape index: {4}]   ;;  %s4756_s6 = inlined_call_operand.hbm [shape: s8[1024,128], index: 6, kind: output, shape index: {5}]   ;;  %s4757_s7 = inlined_call_operand.hbm [shape: s8[1024,128], index: 7, kind: output, shape index: {6}]   ;;  %s4758_s8 = inlined_call_operand.hbm [shape: s8[1024,128], index: 8, kind: output, shape index: {7}]  }
   0x1   :  { %4834 = sst [smem:[#allocation48_spill]] %s4750_s0 }
   0x2   :  { %14 = vsyncpa [#allocation3], 0 }
   0x3   :  { %16 = vsyncpa [#allocation3 + $0x1], 0 }
   0x4   :  { %17 = vsyncpa [#allocation4], 0 }
   0x5   :  { %19 = vsyncpa [#allocation4 + $0x1], 0 }
   0x6   :  { %20 = vsyncpa [#allocation7], 0 }
   0x7   :  { %22 = vsyncpa [#allocation7 + $0x1], 0 }
   0x8   :  { %23 = vsyncpa [#allocation10], 0 }
   0x9   :  { %25 = vsyncpa [#allocation10 + $0x1], 0 }
   0xa   :  { %26 = vsyncpa [#allocation13], 0 }
   0xb   :  { %28 = vsyncpa [#allocation13 + $0x1], 0 }
   0xc   :  { %29 = vsyncpa [#allocation16], 0 }
   0xd   :  { %31 = vsyncpa [#allocation16 + $0x1], 0  ;;  %s2616_s27 = smov 0   ;;  %s2618_s28 = smov 0  }
   0xe   :  { %s2620_s29 = smov 0   ;;  %s2622_s30 = smov 0  }
   0xf LB: > { %4835 = sst [smem:[#allocation23_spill]] %s2547_s28  ;;  %s2637_s9 = sadd.s32 4294967295, %s2555_s30   ;;  %s2555_s30 = sphi %s2622_s30, %s5000_s30   ;;  %s2551_s29 = sphi %s2620_s29, %s5003_s29   ;;  %s2547_s28 = sphi %s2618_s28, %s5002_s28   ;;  %s2543_s27 = sphi %s2616_s27, %s5001_s27  }
  0x10   : > { %4836 = sst [smem:[#allocation24_spill]] %s2551_s29  ;;  %s4798_s10 = sadd.s32 4294967294, %s2555_s30  }
  0x11   : > { %4837 = sst [smem:[#allocation25_spill]] %s2555_s30  ;;  %s2641_s11 = sadd.s32 1, %s2555_s30  }
  0x12   : > { %4838 = sst [smem:[#allocation26_spill]] %s2641_s11  ;;  %s44_s12 = sadd.s32 1, %s2551_s29 }
  0x13   : > { %s41_s13 = ssub.s32 %s2555_s30, %s2641_s11  ;;  %p51_p0 = scmp.ne.s32.totalorder %s2551_s29, %s2547_s28 }
  0x14   : > { %p42_p1 = scmp.eq.s32.totalorder %s41_s13, 0  ;;  %p52_p2 = scmp.eq.s32.totalorder %s2555_s30, 0 }
  0x15   : > { %p57_p3 = scmp.ne.s32.totalorder %s2547_s28, %s2543_s27  ;;  %p58_p4 = scmp.eq.s32.totalorder %s2637_s9, 0 }
  0x16   : > { %s2653_s14 = scalar_select %p42_p1, %s2551_s29, %s44_s12  }
  0x17   : > { %p2655_p5 = por %p52_p2, %p51_p0  ;;  %p2659_p6 = por %p58_p4, %p57_p3 }
  0x18   : > { %4839 = sst [smem:[#allocation27_spill]] %s2653_s14  ;;  %p81_p7 = scmp.eq.s32.totalorder %s2637_s9, 1 }
  0x19   : > { %p87_p8 = scmp.eq.s32.totalorder %s4798_s10, 1  ;;  %p2144_p10 = scmp.lt.s32.totalorder %s2555_s30, 2 }
  0x1a   : > { %p2668_p11 = por %p81_p7, %p51_p0  ;;  %s289_s19 = sand.u32 1, %s2551_s29  }
  0x1b   : > { %p2672_p12 = por %p87_p8, %p57_p3  ;;  %s2088_s20 = sshll.u32 %s2555_s30, 13 }
  0x1c   : > { %s4842_s17 = scalar_select %p2668_p11, 1, 0 }
  0x1d   : > { %s4843_s18 = scalar_select %p2672_p12, 1, 0 }
  0x1e   : > { %s1985_s21 = sshll.u32 %s289_s19, 9  ;;  %s4845_s0 = sld [smem:[#allocation48_spill]] }
  0x1f   : > { %4844 = sst [smem:[#allocation28_spill]] %s4843_s18  ;;  %s293_s25 = scalar_lea.vmem [#allocation2], %s1985_s21 }
  0x20   : > { %s300_s26 = sshll.u32 %s293_s25, 4  ;;  %p2685_p13 = pnand %p2144_p10, %p2655_p5  ;;  %s2689_s26 = int_to_ptr.vmem [resolvable:$true] %s300_s26 }
  0x21   : > { %s2691_s13 = scalar_lea.sflag [#allocation3], %s289_s19 }
  0x22   : > { %p2249_p1 = pneg %p2685_p13 }
  0x24   : > { %s2681_s24 = scalar_lea.hbm %s4845_s0, %s2088_s20  ;;  %s2252_s21 = scalar_lea.hbm %s4845_s0, 16384 }
  0x25   : > { %s2247_s22 = scalar_lea.hbm %s2681_s24, 8192  ;;  %p2253_p4 = scmp.lt.u32.totalorder %s2681_s24, %s4845_s0 }
  0x26   : > { %p2248_p0 = scmp.ne.s32.totalorder %s2681_s24, %s2247_s22  ;;  %p2254_p5 = scmp.lt.u32.totalorder %s2252_s21, %s2247_s22 }
  0x27   : > { %p2256_p8 = scmp.lt.u32.totalorder %s2247_s22, %s2681_s24 }
  0x28   : > { %p2250_p2 = pnand %p2249_p1, %p2248_p0  ;;  %p2255_p7 = por %p2254_p5, %p2253_p4 }
  0x2a   : > { %p2251_p3 = pneg %p2250_p2  ;;  %p2257_p10 = por %p2256_p8, %p2255_p7 }
  0x2c   : > { %p2258_p9 = pnand %p2257_p10, %p2251_p3 }
  0x2e   : > { %2261 = shalt.err (!%p2258_p9)
}
  0x2f   : > { %s2262_s19 = scalar_lea.vmem %s2689_s26, 8192  ;;  %s2557_s20 = smov [#allocation2]  }
  0x30   : > { %p2263_p0 = scmp.ne.s32.totalorder %s2689_s26, %s2262_s19  ;;  %s2267_s15 = sshll.u32 %s2557_s20, 4  ;;  %s2268_s15 = int_to_ptr.vmem [resolvable:$false] %s2267_s15 }
  0x31   : > { %s2269_s23 = scalar_lea.vmem %s2268_s15, 16384  ;;  %p2270_p11 = scmp.lt.s32.totalorder %s2689_s26, %s2268_s15 }
  0x32   : > { %p2265_p2 = pnand %p2263_p0, %p2249_p1  ;;  %p2271_p4 = scmp.lt.s32.totalorder %s2269_s23, %s2262_s19 }
  0x34   : > { %p2266_p12 = pneg %p2265_p2  ;;  %p2272_p5 = por %p2271_p4, %p2270_p11 }
  0x36   : > { %p2273_p7 = pnand %p2272_p5, %p2266_p12 }
  0x38   : > { %2276 = shalt.err (!%p2273_p7)
}
  0x39   : > { %s2558_s22 = smov 128   ;;  %s2559_s21 = smov 8  }
  0x3a   : > { %2118 = dma.hbm_to_vmem [thread:$0]  (!%p2685_p13), %s2681_s24, 8192, %s2689_s26, %s2691_s13, %s2558_s22, %s2558_s22, %s2559_s21  }
  0x3b   : > { %p1988_p9 = scmp.ge.s32.totalorder %s2555_s30, 1  ;;  %p308_p1 = scmp.lt.s32.totalorder %s2555_s30, 3 }
  0x3d   : > { %p309_p3 = pnand %p1988_p9, %p308_p1 }
  0x3f   : > { %312 = sbr.rel (%p309_p3) target bundleno = 510 (0x1fe), region = 24 }
  0x46   : > { %s2722_s25 = sand.u32 1, %s2547_s28  }
  0x47   : > { %s2725_s19 = sshll.u32 %s2722_s25, 9  ;;  %s315_s20 = scalar_lea.sflag [#allocation3], %s2722_s25 }
  0x48   : > { %s2729_s15 = scalar_lea.vmem [#allocation2], %s2725_s19 }
  0x49   : > { %2518 = dma.done.wait (%p2659_p6), %s315_s20, 8192  }
  0x4a   : > { %2520 = vsyncadd (%p2659_p6), %s315_s20, 4294959104  ;;  %v2736_v0 = vld [vmem:[%s2729_s15] sm:$0xff]  ;;  %v2739_v1 = vld [vmem:[%s2729_s15 + $0x8] sm:$0xff]  ;;  %s2773_s16 = scalar_lea.vmem [#allocation6], %s2725_s19  ;;  %s2791_s24 = scalar_lea.vmem [#allocation11], %s2725_s19 }
  0x4b   : > { %v2742_v2 = vld [vmem:[%s2729_s15 + $0x10] sm:$0xff]  ;;  %v1998_v3 = vadd.f32 -3.0, %v2736_v0  ;;  %v1999_v4 = vadd.f32 -3.0, %v2739_v1  ;;  %v2748_v6 = vld [vmem:[%s2729_s15 + $0x18] sm:$0xff]  ;;  %v2751_v7 = vld [vmem:[%s2729_s15 + $0x20] sm:$0xff]  ;;  %v973_v9 = vmul.f32 %v2736_v0, %v2736_v0  ;;  %v974_v16 = vmul.f32 %v2739_v1, %v2739_v1  ;;  %s3125_s26 = scalar_lea.vmem [#allocation9], %s2725_s19 }
  0x4c   : > { %v2000_v5 = vadd.f32 -3.0, %v2742_v2  ;;  %v2754_v8 = vld [vmem:[%s2729_s15 + $0x28] sm:$0xff]  ;;  %v2001_v10 = vadd.f32 -3.0, %v2748_v6  ;;  %v2002_v11 = vadd.f32 -3.0, %v2751_v7  ;;  %v2762_v13 = vld [vmem:[%s2729_s15 + $0x30] sm:$0xff]  ;;  %v2765_v14 = vld [vmem:[%s2729_s15 + $0x38] sm:$0xff]  ;;  %v975_v23 = vmul.f32 %v2742_v2, %v2742_v2 }
  0x4d   : > { %v2003_v12 = vadd.f32 -3.0, %v2754_v8  ;;  %v2768_v15 = vld [vmem:[%s2729_s15 + $0x40] sm:$0xff]  ;;  %653 = vst [vmem:[%s2773_s16] sm:$0xff] %v1998_v3  ;;  %654 = vst [vmem:[%s2773_s16 + $0x8] sm:$0xff] %v1999_v4  ;;  %v2004_v17 = vadd.f32 -3.0, %v2762_v13  ;;  %v2005_v18 = vadd.f32 -3.0, %v2765_v14  ;;  %v2782_v20 = vld [vmem:[%s2729_s15 + $0x48] sm:$0xff]  ;;  %v976_v30 = vmul.f32 %v2748_v6, %v2748_v6 }
  0x4e   : > { %655 = vst [vmem:[%s2773_s16 + $0x10] sm:$0xff] %v2000_v5  ;;  %v2006_v19 = vadd.f32 -3.0, %v2768_v15  ;;  %v2785_v21 = vld [vmem:[%s2729_s15 + $0x50] sm:$0xff]  ;;  %v2788_v22 = vld [vmem:[%s2729_s15 + $0x58] sm:$0xff]  ;;  %1037 = vst [vmem:[%s2791_s24] sm:$0xff] %v973_v9  ;;  %v2007_v24 = vadd.f32 -3.0, %v2782_v20  ;;  %v977_v37 = vmul.f32 %v2751_v7, %v2751_v7  ;;  %v978_v44 = vmul.f32 %v2754_v8, %v2754_v8  ;;  %s3245_s12 = sshll.u32 %s2722_s25, 7 }
  0x4f   : > { %656 = vst [vmem:[%s2773_s16 + $0x18] sm:$0xff] %v2001_v10  ;;  %657 = vst [vmem:[%s2773_s16 + $0x20] sm:$0xff] %v2002_v11  ;;  %v2008_v25 = vadd.f32 -3.0, %v2785_v21  ;;  %v2009_v26 = vadd.f32 -3.0, %v2788_v22  ;;  %v2803_v27 = vld [vmem:[%s2729_s15 + $0x60] sm:$0xff]  ;;  %v2806_v28 = vld [vmem:[%s2729_s15 + $0x68] sm:$0xff]  ;;  %v979_v51 = vmul.f32 %v2762_v13, %v2762_v13  ;;  %v980_v58 = vmul.f32 %v2765_v14, %v2765_v14 }
  0x50   : > { %658 = vst [vmem:[%s2773_s16 + $0x28] sm:$0xff] %v2003_v12  ;;  %v2809_v29 = vld [vmem:[%s2729_s15 + $0x70] sm:$0xff]  ;;  %1038 = vst [vmem:[%s2791_s24 + $0x8] sm:$0xff] %v974_v16  ;;  %v2010_v31 = vadd.f32 -3.0, %v2803_v27  ;;  %v2011_v32 = vadd.f32 -3.0, %v2806_v28  ;;  %v2821_v34 = vld [vmem:[%s2729_s15 + $0x78] sm:$0xff]  ;;  %v981_v4 = vmul.f32 %v2768_v15, %v2768_v15 }
  0x51   : > { %659 = vst [vmem:[%s2773_s16 + $0x30] sm:$0xff] %v2004_v17  ;;  %660 = vst [vmem:[%s2773_s16 + $0x38] sm:$0xff] %v2005_v18  ;;  %v2012_v33 = vadd.f32 -3.0, %v2809_v29  ;;  %v2824_v35 = vld [vmem:[%s2729_s15 + $0x80] sm:$0xff]  ;;  %v2827_v36 = vld [vmem:[%s2729_s15 + $0x88] sm:$0xff]  ;;  %v2013_v38 = vadd.f32 -3.0, %v2821_v34  ;;  %v982_v17 = vmul.f32 %v2782_v20, %v2782_v20 }
  0x52   : > { %661 = vst [vmem:[%s2773_s16 + $0x40] sm:$0xff] %v2006_v19  ;;  %1039 = vst [vmem:[%s2791_s24 + $0x10] sm:$0xff] %v975_v23  ;;  %v2014_v39 = vadd.f32 -3.0, %v2824_v35  ;;  %v2015_v40 = vadd.f32 -3.0, %v2827_v36  ;;  %v2839_v41 = vld [vmem:[%s2729_s15 + $0x90] sm:$0xff]  ;;  %v2842_v42 = vld [vmem:[%s2729_s15 + $0x98] sm:$0xff] }
  0x53   : > { %662 = vst [vmem:[%s2773_s16 + $0x48] sm:$0xff] %v2007_v24  ;;  %663 = vst [vmem:[%s2773_s16 + $0x50] sm:$0xff] %v2008_v25  ;;  %v2845_v43 = vld [vmem:[%s2729_s15 + $0xa0] sm:$0xff]  ;;  %v2016_v45 = vadd.f32 -3.0, %v2839_v41  ;;  %v2017_v46 = vadd.f32 -3.0, %v2842_v42  ;;  %v2857_v48 = vld [vmem:[%s2729_s15 + $0xa8] sm:$0xff] }
  0x54   : > { %664 = vst [vmem:[%s2773_s16 + $0x58] sm:$0xff] %v2009_v26  ;;  %1040 = vst [vmem:[%s2791_s24 + $0x18] sm:$0xff] %v976_v30  ;;  %v2018_v47 = vadd.f32 -3.0, %v2845_v43  ;;  %v2860_v49 = vld [vmem:[%s2729_s15 + $0xb0] sm:$0xff]  ;;  %v2863_v50 = vld [vmem:[%s2729_s15 + $0xb8] sm:$0xff]  ;;  %v2019_v52 = vadd.f32 -3.0, %v2857_v48  ;;  %v983_v30 = vmul.f32 %v2785_v21, %v2785_v21 }
  0x55   : > { %665 = vst [vmem:[%s2773_s16 + $0x60] sm:$0xff] %v2010_v31  ;;  %666 = vst [vmem:[%s2773_s16 + $0x68] sm:$0xff] %v2011_v32  ;;  %v2020_v53 = vadd.f32 -3.0, %v2860_v49  ;;  %v2021_v54 = vadd.f32 -3.0, %v2863_v50  ;;  %v2875_v55 = vld [vmem:[%s2729_s15 + $0xc0] sm:$0xff]  ;;  %v2878_v56 = vld [vmem:[%s2729_s15 + $0xc8] sm:$0xff] }
  0x56   : > { %667 = vst [vmem:[%s2773_s16 + $0x70] sm:$0xff] %v2012_v33  ;;  %1041 = vst [vmem:[%s2791_s24 + $0x20] sm:$0xff] %v977_v37  ;;  %v2881_v57 = vld [vmem:[%s2729_s15 + $0xd0] sm:$0xff]  ;;  %v2022_v59 = vadd.f32 -3.0, %v2875_v55  ;;  %v2023_v60 = vadd.f32 -3.0, %v2878_v56  ;;  %v2893_v62 = vld [vmem:[%s2729_s15 + $0xd8] sm:$0xff] }
  0x57   : > { %668 = vst [vmem:[%s2773_s16 + $0x78] sm:$0xff] %v2013_v38  ;;  %669 = vst [vmem:[%s2773_s16 + $0x80] sm:$0xff] %v2014_v39  ;;  %v2024_v61 = vadd.f32 -3.0, %v2881_v57  ;;  %v2896_v63 = vld [vmem:[%s2729_s15 + $0xe0] sm:$0xff]  ;;  %v2899_v3 = vld [vmem:[%s2729_s15 + $0xe8] sm:$0xff]  ;;  %v2025_v5 = vadd.f32 -3.0, %v2893_v62 }
  0x58   : > { %670 = vst [vmem:[%s2773_s16 + $0x88] sm:$0xff] %v2015_v40  ;;  %1042 = vst [vmem:[%s2791_s24 + $0x28] sm:$0xff] %v978_v44  ;;  %v2026_v9 = vadd.f32 -3.0, %v2896_v63  ;;  %v2027_v10 = vadd.f32 -3.0, %v2899_v3  ;;  %v2911_v11 = vld [vmem:[%s2729_s15 + $0xf0] sm:$0xff]  ;;  %v2914_v12 = vld [vmem:[%s2729_s15 + $0xf8] sm:$0xff]  ;;  %v984_v40 = vmul.f32 %v2788_v22, %v2788_v22 }
  0x59   : > { %671 = vst [vmem:[%s2773_s16 + $0x90] sm:$0xff] %v2016_v45  ;;  %672 = vst [vmem:[%s2773_s16 + $0x98] sm:$0xff] %v2017_v46  ;;  %v2917_v16 = vld [vmem:[%s2729_s15 + $0x100] sm:$0xff]  ;;  %v2028_v18 = vadd.f32 -3.0, %v2911_v11  ;;  %v2029_v19 = vadd.f32 -3.0, %v2914_v12  ;;  %v2929_v24 = vld [vmem:[%s2729_s15 + $0x108] sm:$0xff] }
  0x5a   : > { %673 = vst [vmem:[%s2773_s16 + $0xa0] sm:$0xff] %v2018_v47  ;;  %1043 = vst [vmem:[%s2791_s24 + $0x30] sm:$0xff] %v979_v51  ;;  %v2030_v23 = vadd.f32 -3.0, %v2917_v16  ;;  %v2932_v25 = vld [vmem:[%s2729_s15 + $0x110] sm:$0xff]  ;;  %v2935_v26 = vld [vmem:[%s2729_s15 + $0x118] sm:$0xff]  ;;  %v2031_v31 = vadd.f32 -3.0, %v2929_v24 }
  0x5b   : > { %674 = vst [vmem:[%s2773_s16 + $0xa8] sm:$0xff] %v2019_v52  ;;  %675 = vst [vmem:[%s2773_s16 + $0xb0] sm:$0xff] %v2020_v53  ;;  %v2032_v32 = vadd.f32 -3.0, %v2932_v25  ;;  %v2033_v33 = vadd.f32 -3.0, %v2935_v26  ;;  %v2947_v37 = vld [vmem:[%s2729_s15 + $0x120] sm:$0xff]  ;;  %v2950_v38 = vld [vmem:[%s2729_s15 + $0x128] sm:$0xff]  ;;  %v985_v53 = vmul.f32 %v2803_v27, %v2803_v27 }
  0x5c   : > { %676 = vst [vmem:[%s2773_s16 + $0xb8] sm:$0xff] %v2021_v54  ;;  %1044 = vst [vmem:[%s2791_s24 + $0x38] sm:$0xff] %v980_v58  ;;  %v2953_v39 = vld [vmem:[%s2729_s15 + $0x130] sm:$0xff]  ;;  %v2034_v44 = vadd.f32 -3.0, %v2947_v37  ;;  %v2035_v45 = vadd.f32 -3.0, %v2950_v38  ;;  %v2965_v47 = vld [vmem:[%s2729_s15 + $0x138] sm:$0xff] }
  0x5d   : > { %677 = vst [vmem:[%s2773_s16 + $0xc0] sm:$0xff] %v2022_v59  ;;  %678 = vst [vmem:[%s2773_s16 + $0xc8] sm:$0xff] %v2023_v60  ;;  %v2036_v46 = vadd.f32 -3.0, %v2953_v39  ;;  %v2968_v51 = vld [vmem:[%s2729_s15 + $0x140] sm:$0xff]  ;;  %v2971_v52 = vld [vmem:[%s2729_s15 + $0x148] sm:$0xff]  ;;  %v2037_v54 = vadd.f32 -3.0, %v2965_v47 }
  0x5e   : > { %679 = vst [vmem:[%s2773_s16 + $0xd0] sm:$0xff] %v2024_v61  ;;  %1045 = vst [vmem:[%s2791_s24 + $0x40] sm:$0xff] %v981_v4  ;;  %v2038_v58 = vadd.f32 -3.0, %v2968_v51  ;;  %v2039_v59 = vadd.f32 -3.0, %v2971_v52  ;;  %v2983_v60 = vld [vmem:[%s2729_s15 + $0x150] sm:$0xff]  ;;  %v2986_v61 = vld [vmem:[%s2729_s15 + $0x158] sm:$0xff] }
  0x5f   : > { %680 = vst [vmem:[%s2773_s16 + $0xd8] sm:$0xff] %v2025_v5  ;;  %681 = vst [vmem:[%s2773_s16 + $0xe0] sm:$0xff] %v2026_v9  ;;  %v2989_v4 = vld [vmem:[%s2729_s15 + $0x160] sm:$0xff]  ;;  %v986_v5 = vmul.f32 %v2806_v28, %v2806_v28  ;;  %v2040_v9 = vadd.f32 -3.0, %v2983_v60  ;;  %vm1101_vm0 = vcmp.gt.f32.partialorder %v2736_v0, 2.0  ;;  %vm1102_vm1 = vcmp.gt.f32.partialorder %v2739_v1, 2.0 }
  0x60   : > { %682 = vst [vmem:[%s2773_s16 + $0xe8] sm:$0xff] %v2027_v10  ;;  %1046 = vst [vmem:[%s2791_s24 + $0x48] sm:$0xff] %v982_v17  ;;  %v2041_v10 = vadd.f32 -3.0, %v2986_v61  ;;  %v2042_v17 = vadd.f32 -3.0, %v2989_v4  ;;  %vm1103_vm2 = vcmp.gt.f32.partialorder %v2742_v2, 2.0  ;;  %vm1104_vm3 = vcmp.gt.f32.partialorder %v2748_v6, 2.0 }
  0x61   : > { %683 = vst [vmem:[%s2773_s16 + $0xf0] sm:$0xff] %v2028_v18  ;;  %684 = vst [vmem:[%s2773_s16 + $0xf8] sm:$0xff] %v2029_v19  ;;  %v3001_v18 = vld [vmem:[%s2729_s15 + $0x168] sm:$0xff]  ;;  %v3004_v19 = vld [vmem:[%s2729_s15 + $0x170] sm:$0xff]  ;;  %vm1105_vm5 = vcmp.gt.f32.partialorder %v2751_v7, 2.0  ;;  %vm1106_vm6 = vcmp.gt.f32.partialorder %v2754_v8, 2.0 }
  0x62   : > { %685 = vst [vmem:[%s2773_s16 + $0x100] sm:$0xff] %v2030_v23  ;;  %1047 = vst [vmem:[%s2791_s24 + $0x50] sm:$0xff] %v983_v30  ;;  %v3007_v23 = vld [vmem:[%s2729_s15 + $0x178] sm:$0xff]  ;;  %v987_v30 = vmul.f32 %v2809_v29, %v2809_v29  ;;  %vm1107_vm8 = vcmp.gt.f32.partialorder %v2762_v13, 2.0  ;;  %vm1108_vm9 = vcmp.gt.f32.partialorder %v2765_v14, 2.0  ;;  %vm1109_vm12 = vcmp.gt.f32.partialorder %v2768_v15, 2.0 }
  0x63   : > { %686 = vst [vmem:[%s2773_s16 + $0x108] sm:$0xff] %v2031_v31  ;;  %687 = vst [vmem:[%s2773_s16 + $0x110] sm:$0xff] %v2032_v32  ;;  %v2043_v31 = vadd.f32 -3.0, %v3001_v18  ;;  %v2044_v32 = vadd.f32 -3.0, %v3004_v19  ;;  %vm1110_vm13 = vcmp.gt.f32.partialorder %v2782_v20, 2.0  ;;  %s3267_s13 = scalar_lea.vmem [#allocation12], %s3245_s12 }
  0x64   : > { %688 = vst [vmem:[%s2773_s16 + $0x118] sm:$0xff] %v2033_v33  ;;  %4847 = vst [vmem:[#allocation29_spill] sm:$0xff] %v2983_v60  ;;  %v2045_v33 = vadd.f32 -3.0, %v3007_v23  ;;  %vm1111_vm15 = vcmp.gt.f32.partialorder %v2785_v21, 2.0  ;;  %s3345_s23 = scalar_lea.vmem [#allocation5], %s2725_s19  ;;  %s3546_s22 = sand.u32 1, %s2637_s9  }
  0x65   : > { %4848 = vst [vmem:[#allocation30_spill] sm:$0xff] %v2986_v61  ;;  %4849 = vst [vmem:[#allocation31_spill] sm:$0xff] %v2989_v4  ;;  %s3568_s21 = sshll.u32 %s2637_s9, 13  ;;  %s1598_s14 = sshll.u32 %s2773_s16, 4  ;;  %s3640_s14 = int_to_ptr.vmem [resolvable:$true] %s1598_s14 }
  0x66   : > { %1048 = vst [vmem:[%s2791_s24 + $0x58] sm:$0xff] %v984_v40  ;;  %689 = vst [vmem:[%s2773_s16 + $0x120] sm:$0xff] %v2034_v44  ;;  %v3019_v40 = vld [vmem:[%s2729_s15 + $0x180] sm:$0xff]  ;;  %v3022_v44 = vld [vmem:[%s2729_s15 + $0x188] sm:$0xff]  ;;  %s3606_s0 = scalar_lea.hbm %s4752_s2, %s3568_s21  ;;  %s3651_s10 = scalar_lea.vmem [#allocation8], %s2725_s19 }
  0x67   : > { %690 = vst [vmem:[%s2773_s16 + $0x128] sm:$0xff] %v2035_v45  ;;  %691 = vst [vmem:[%s2773_s16 + $0x130] sm:$0xff] %v2036_v46  ;;  %v3025_v45 = vld [vmem:[%s2729_s15 + $0x190] sm:$0xff]  ;;  %v988_v46 = vmul.f32 %v2821_v34, %v2821_v34  ;;  %p4928_p11 = scmp.ne.s32.totalorder %s4842_s17, 0  ;;  %s2561_s20 = smov [#allocation6]  }
  0x68   : > { %4850 = vst [vmem:[#allocation32_spill] sm:$0xff] %v3001_v18  ;;  %4851 = vst [vmem:[#allocation33_spill] sm:$0xff] %v3004_v19  ;;  %s2281_s29 = sshll.u32 %s2561_s20, 4  ;;  %s2282_s29 = int_to_ptr.vmem [resolvable:$false] %s2281_s29 }
  0x69   : > { %4852 = vst [vmem:[#allocation34_spill] sm:$0xff] %v3007_v23  ;;  %1049 = vst [vmem:[%s2791_s24 + $0x60] sm:$0xff] %v985_v53  ;;  %v2046_v53 = vadd.f32 -3.0, %v3019_v40  ;;  %v3043_v23 = vld [vmem:[%s2729_s15 + $0x1a8] sm:$0xff]  ;;  %s2283_s28 = scalar_lea.vmem %s2282_s29, 16384  ;;  %p2284_p8 = scmp.lt.s32.totalorder %s3640_s14, %s2282_s29 }
  0x6a   : > { %692 = vst [vmem:[%s2773_s16 + $0x138] sm:$0xff] %v2037_v54  ;;  %693 = vst [vmem:[%s2773_s16 + $0x140] sm:$0xff] %v2038_v58  ;;  %v2047_v54 = vadd.f32 -3.0, %v3022_v44  ;;  %v2048_v58 = vadd.f32 -3.0, %v3025_v45 }
  0x6b   : > { %694 = vst [vmem:[%s2773_s16 + $0x148] sm:$0xff] %v2039_v59  ;;  %4853 = vst [vmem:[#allocation35_spill] sm:$0xff] %v3019_v40  ;;  %v3037_v59 = vld [vmem:[%s2729_s15 + $0x198] sm:$0xff]  ;;  %v3061_v40 = vld [vmem:[%s2729_s15 + $0x1c0] sm:$0xff] }
  0x6c   : > { %4854 = vst [vmem:[#allocation36_spill] sm:$0xff] %v3022_v44  ;;  %4855 = vst [vmem:[#allocation37_spill] sm:$0xff] %v3025_v45  ;;  %v2051_v45 = vadd.f32 -3.0, %v3043_v23  ;;  %v3055_v44 = vld [vmem:[%s2729_s15 + $0x1b0] sm:$0xff] }
  0x6d   : > { %1050 = vst [vmem:[%s2791_s24 + $0x68] sm:$0xff] %v986_v5  ;;  %695 = vst [vmem:[%s2773_s16 + $0x150] sm:$0xff] %v2040_v9  ;;  %v3040_v5 = vld [vmem:[%s2729_s15 + $0x1a0] sm:$0xff]  ;;  %v989_v9 = vmul.f32 %v2824_v35, %v2824_v35 }
  0x6e   : > { %696 = vst [vmem:[%s2773_s16 + $0x158] sm:$0xff] %v2041_v10  ;;  %697 = vst [vmem:[%s2773_s16 + $0x160] sm:$0xff] %v2042_v17  ;;  %v2049_v10 = vadd.f32 -3.0, %v3037_v59  ;;  %v2050_v17 = vadd.f32 -3.0, %v3040_v5 }
  0x6f   : > { %4856 = vst [vmem:[#allocation38_spill] sm:$0xff] %v3037_v59  ;;  %4857 = vst [vmem:[#allocation39_spill] sm:$0xff] %v3040_v5  ;;  %v3073_v5 = vld [vmem:[%s2729_s15 + $0x1c8] sm:$0xff]  ;;  %v3079_v59 = vld [vmem:[%s2729_s15 + $0x1d8] sm:$0xff] }
  0x70   : > { %4858 = vst [vmem:[#allocation40_spill] sm:$0xff] %v3043_v23  ;;  %1051 = vst [vmem:[%s2791_s24 + $0x70] sm:$0xff] %v987_v30  ;;  %v3058_v30 = vld [vmem:[%s2729_s15 + $0x1b8] sm:$0xff]  ;;  %v2054_v23 = vadd.f32 -3.0, %v3061_v40 }
  0x71   : > { %698 = vst [vmem:[%s2773_s16 + $0x168] sm:$0xff] %v2043_v31  ;;  %699 = vst [vmem:[%s2773_s16 + $0x170] sm:$0xff] %v2044_v32  ;;  %v990_v31 = vmul.f32 %v2827_v36, %v2827_v36  ;;  %v2052_v32 = vadd.f32 -3.0, %v3055_v44 }
  0x72   : > { %700 = vst [vmem:[%s2773_s16 + $0x178] sm:$0xff] %v2045_v33  ;;  %4859 = vst [vmem:[#allocation41_spill] sm:$0xff] %v3055_v44  ;;  %v2053_v33 = vadd.f32 -3.0, %v3058_v30  ;;  %v3097_v44 = vld [vmem:[%s2729_s15 + $0x1f0] sm:$0xff] }
  0x73   : > { %4860 = vst [vmem:[#allocation42_spill] sm:$0xff] %v3058_v30  ;;  %4861 = vst [vmem:[#allocation43_spill] sm:$0xff] %v3061_v40  ;;  %v2057_v40 = vadd.f32 -3.0, %v3079_v59  ;;  %v3091_v30 = vld [vmem:[%s2729_s15 + $0x1e0] sm:$0xff] }
  0x74   : > { %1052 = vst [vmem:[%s2791_s24 + $0x78] sm:$0xff] %v988_v46  ;;  %701 = vst [vmem:[%s2773_s16 + $0x180] sm:$0xff] %v2046_v53  ;;  %v3076_v46 = vld [vmem:[%s2729_s15 + $0x1d0] sm:$0xff]  ;;  %v991_v53 = vmul.f32 %v2839_v41, %v2839_v41 }
  0x75   : > { %702 = vst [vmem:[%s2773_s16 + $0x188] sm:$0xff] %v2047_v54  ;;  %703 = vst [vmem:[%s2773_s16 + $0x190] sm:$0xff] %v2048_v58  ;;  %v2055_v54 = vadd.f32 -3.0, %v3073_v5  ;;  %v2056_v58 = vadd.f32 -3.0, %v3076_v46 }
  0x76   : > { %4862 = vst [vmem:[#allocation44_spill] sm:$0xff] %v3073_v5  ;;  %4863 = vst [vmem:[#allocation45_spill] sm:$0xff] %v3076_v46  ;;  %v3109_v46 = vld [vmem:[%s2729_s15 + $0x1f8] sm:$0xff] }
  0x77   : > { %4864 = vst [vmem:[#allocation46_spill] sm:$0xff] %v3079_v59  ;;  %1053 = vst [vmem:[%s2791_s24 + $0x80] sm:$0xff] %v989_v9  ;;  %v3094_v9 = vld [vmem:[%s2729_s15 + $0x1e8] sm:$0xff]  ;;  %v2060_v59 = vadd.f32 -3.0, %v3097_v44 }
  0x78   : > { %704 = vst [vmem:[%s2773_s16 + $0x198] sm:$0xff] %v2049_v10  ;;  %705 = vst [vmem:[%s2773_s16 + $0x1a0] sm:$0xff] %v2050_v17  ;;  %v2058_v10 = vadd.f32 -3.0, %v3091_v30  ;;  %v2059_v17 = vadd.f32 -3.0, %v3094_v9 }
  0x79   : > { %706 = vst [vmem:[%s2773_s16 + $0x1a8] sm:$0xff] %v2051_v45  ;;  %4865 = vst [vmem:[#allocation47_spill] sm:$0xff] %v3094_v9  ;;  %v992_v45 = vmul.f32 %v2842_v42, %v2842_v42  ;;  %v848_v9 = vmul.f32 0.5, %v2748_v6 }
  0x7a   : > { %1054 = vst [vmem:[%s2791_s24 + $0x88] sm:$0xff] %v990_v31  ;;  %707 = vst [vmem:[%s2773_s16 + $0x1b0] sm:$0xff] %v2052_v32  ;;  %v845_v31 = vmul.f32 0.5, %v2736_v0  ;;  %v846_v32 = vmul.f32 0.5, %v2739_v1 }
  0x7b   : > { %708 = vst [vmem:[%s2773_s16 + $0x1b8] sm:$0xff] %v2053_v33  ;;  %709 = vst [vmem:[%s2773_s16 + $0x1c0] sm:$0xff] %v2054_v23  ;;  %v2061_v23 = vadd.f32 -3.0, %v3109_v46  ;;  %v847_v33 = vmul.f32 0.5, %v2742_v2 }
  0x7c   : > { %1055 = vst [vmem:[%s2791_s24 + $0x90] sm:$0xff] %v991_v53  ;;  %710 = vst [vmem:[%s2773_s16 + $0x1c8] sm:$0xff] %v2055_v54  ;;  %v850_v53 = vmul.f32 0.5, %v2754_v8  ;;  %v851_v54 = vmul.f32 0.5, %v2762_v13 }
  0x7d   : > { %711 = vst [vmem:[%s2773_s16 + $0x1d0] sm:$0xff] %v2056_v58  ;;  %712 = vst [vmem:[%s2773_s16 + $0x1d8] sm:$0xff] %v2057_v40  ;;  %v849_v40 = vmul.f32 0.5, %v2751_v7  ;;  %v852_v58 = vmul.f32 0.5, %v2765_v14 }
  0x7e   : > { %1056 = vst [vmem:[%s2791_s24 + $0x98] sm:$0xff] %v992_v45  ;;  %713 = vst [vmem:[%s2773_s16 + $0x1e0] sm:$0xff] %v2058_v10  ;;  %v854_v45 = vmul.f32 0.5, %v2782_v20  ;;  %v855_v10 = vmul.f32 0.5, %v2785_v21 }
  0x7f   : > { %714 = vst [vmem:[%s2773_s16 + $0x1e8] sm:$0xff] %v2059_v17  ;;  %715 = vst [vmem:[%s2773_s16 + $0x1f0] sm:$0xff] %v2060_v59  ;;  %v853_v59 = vmul.f32 0.5, %v2768_v15  ;;  %v856_v17 = vmul.f32 0.5, %v2788_v22 }
  0x80   : > { %909 = vst [vmem:[%s3125_s26] sm:$0xff] %v845_v31  ;;  %716 = vst [vmem:[%s2773_s16 + $0x1f8] sm:$0xff] %v2061_v23  ;;  %v857_v31 = vmul.f32 0.5, %v2803_v27  ;;  %v859_v23 = vmul.f32 0.5, %v2809_v29  ;;  %s2277_s16 = scalar_lea.vmem %s3640_s14, 8192 }
  0x81   : > { %910 = vst [vmem:[%s3125_s26 + $0x8] sm:$0xff] %v846_v32  ;;  %911 = vst [vmem:[%s3125_s26 + $0x10] sm:$0xff] %v847_v33  ;;  %v860_v32 = vmul.f32 0.5, %v2821_v34  ;;  %v861_v33 = vmul.f32 0.5, %v2824_v35  ;;  %p2278_p6 = scmp.ne.s32.totalorder %s3640_s14, %s2277_s16  ;;  %p2285_p10 = scmp.lt.s32.totalorder %s2283_s28, %s2277_s16 }
  0x82   : > { %912 = vst [vmem:[%s3125_s26 + $0x18] sm:$0xff] %v848_v9  ;;  %913 = vst [vmem:[%s3125_s26 + $0x20] sm:$0xff] %v849_v40  ;;  %v858_v9 = vmul.f32 0.5, %v2806_v28  ;;  %v862_v40 = vmul.f32 0.5, %v2827_v36 }
  0x83   : > { %914 = vst [vmem:[%s3125_s26 + $0x28] sm:$0xff] %v850_v53  ;;  %915 = vst [vmem:[%s3125_s26 + $0x30] sm:$0xff] %v851_v54  ;;  %v863_v53 = vmul.f32 0.5, %v2839_v41  ;;  %v864_v54 = vmul.f32 0.5, %v2842_v42  ;;  %p2279_p12 = pnand %p2278_p6, %p4928_p11  ;;  %p2286_p0 = por %p2285_p10, %p2284_p8 }
  0x84   : > { %916 = vst [vmem:[%s3125_s26 + $0x38] sm:$0xff] %v852_v58  ;;  %917 = vst [vmem:[%s3125_s26 + $0x40] sm:$0xff] %v853_v59  ;;  %v865_v58 = vmul.f32 0.5, %v2845_v43  ;;  %v866_v59 = vmul.f32 0.5, %v2857_v48 }
  0x85   : > { %918 = vst [vmem:[%s3125_s26 + $0x48] sm:$0xff] %v854_v45  ;;  %919 = vst [vmem:[%s3125_s26 + $0x50] sm:$0xff] %v855_v10  ;;  %v867_v45 = vmul.f32 0.5, %v2860_v49  ;;  %v868_v10 = vmul.f32 0.5, %v2863_v50  ;;  %p2280_p13 = pneg %p2279_p12 }
  0x86   : > { %920 = vst [vmem:[%s3125_s26 + $0x58] sm:$0xff] %v856_v17  ;;  %921 = vst [vmem:[%s3125_s26 + $0x60] sm:$0xff] %v857_v31  ;;  %v869_v17 = vmul.f32 0.5, %v2875_v55  ;;  %v870_v31 = vmul.f32 0.5, %v2878_v56 }
  0x87   : > { %922 = vst [vmem:[%s3125_s26 + $0x68] sm:$0xff] %v858_v9  ;;  %923 = vst [vmem:[%s3125_s26 + $0x70] sm:$0xff] %v859_v23  ;;  %v871_v9 = vmul.f32 0.5, %v2881_v57  ;;  %v872_v23 = vmul.f32 0.5, %v2893_v62  ;;  %p2287_p2 = pnand %p2286_p0, %p2280_p13 }
  0x88   : > { %924 = vst [vmem:[%s3125_s26 + $0x78] sm:$0xff] %v860_v32  ;;  %925 = vst [vmem:[%s3125_s26 + $0x80] sm:$0xff] %v861_v33  ;;  %v873_v32 = vmul.f32 0.5, %v2896_v63  ;;  %v874_v33 = vmul.f32 0.5, %v2899_v3 }
  0x89   : > { %926 = vst [vmem:[%s3125_s26 + $0x88] sm:$0xff] %v862_v40  ;;  %927 = vst [vmem:[%s3125_s26 + $0x90] sm:$0xff] %v863_v53  ;;  %v875_v40 = vmul.f32 0.5, %v2911_v11  ;;  %v876_v53 = vmul.f32 0.5, %v2914_v12 }
  0x8a   : > { %928 = vst [vmem:[%s3125_s26 + $0x98] sm:$0xff] %v864_v54  ;;  %929 = vst [vmem:[%s3125_s26 + $0xa0] sm:$0xff] %v865_v58  ;;  %v877_v54 = vmul.f32 0.5, %v2917_v16  ;;  %v878_v58 = vmul.f32 0.5, %v2929_v24 }
  0x8b   : > { %930 = vst [vmem:[%s3125_s26 + $0xa8] sm:$0xff] %v866_v59  ;;  %931 = vst [vmem:[%s3125_s26 + $0xb0] sm:$0xff] %v867_v45  ;;  %v879_v59 = vmul.f32 0.5, %v2932_v25  ;;  %v880_v45 = vmul.f32 0.5, %v2935_v26 }
  0x8c   : > { %932 = vst [vmem:[%s3125_s26 + $0xb8] sm:$0xff] %v868_v10  ;;  %933 = vst [vmem:[%s3125_s26 + $0xc0] sm:$0xff] %v869_v17  ;;  %v881_v10 = vmul.f32 0.5, %v2947_v37  ;;  %v882_v17 = vmul.f32 0.5, %v2950_v38 }
  0x8d   : > { %934 = vst [vmem:[%s3125_s26 + $0xc8] sm:$0xff] %v870_v31  ;;  %935 = vst [vmem:[%s3125_s26 + $0xd0] sm:$0xff] %v871_v9  ;;  %v883_v31 = vmul.f32 0.5, %v2953_v39  ;;  %v884_v9 = vmul.f32 0.5, %v2965_v47 }
  0x8e   : > { %936 = vst [vmem:[%s3125_s26 + $0xd8] sm:$0xff] %v872_v23  ;;  %937 = vst [vmem:[%s3125_s26 + $0xe0] sm:$0xff] %v873_v32  ;;  %v885_v23 = vmul.f32 0.5, %v2968_v51  ;;  %v886_v32 = vmul.f32 0.5, %v2971_v52 }
  0x8f   : > { %938 = vst [vmem:[%s3125_s26 + $0xe8] sm:$0xff] %v874_v33  ;;  %939 = vst [vmem:[%s3125_s26 + $0xf0] sm:$0xff] %v875_v40  ;;  %v887_v33 = vmul.f32 0.5, %v2983_v60  ;;  %v888_v40 = vmul.f32 0.5, %v2986_v61  ;;  %v4869_v61 = vld [vmem:[#allocation37_spill] sm:$0xff]  ;;  %v4870_v60 = vld [vmem:[#allocation38_spill] sm:$0xff] }
  0x90   : > { %940 = vst [vmem:[%s3125_s26 + $0xf8] sm:$0xff] %v876_v53  ;;  %941 = vst [vmem:[%s3125_s26 + $0x100] sm:$0xff] %v877_v54  ;;  %v889_v53 = vmul.f32 0.5, %v2989_v4  ;;  %v890_v54 = vmul.f32 0.5, %v3001_v18  ;;  %v895_v4 = vmul.f32 0.5, %v4869_v61  ;;  %v896_v18 = vmul.f32 0.5, %v4870_v60 }
  0x91   : > { %942 = vst [vmem:[%s3125_s26 + $0x108] sm:$0xff] %v878_v58  ;;  %943 = vst [vmem:[%s3125_s26 + $0x110] sm:$0xff] %v879_v59  ;;  %v891_v58 = vmul.f32 0.5, %v3004_v19  ;;  %v4866_v59 = vld [vmem:[#allocation34_spill] sm:$0xff] }
  0x92   : > { %944 = vst [vmem:[%s3125_s26 + $0x118] sm:$0xff] %v880_v45  ;;  %945 = vst [vmem:[%s3125_s26 + $0x120] sm:$0xff] %v881_v10  ;;  %v892_v45 = vmul.f32 0.5, %v4866_v59  ;;  %v4867_v10 = vld [vmem:[#allocation35_spill] sm:$0xff]  ;;  %v4873_v59 = vld [vmem:[#allocation41_spill] sm:$0xff] }
  0x93   : > { %946 = vst [vmem:[%s3125_s26 + $0x128] sm:$0xff] %v882_v17  ;;  %947 = vst [vmem:[%s3125_s26 + $0x130] sm:$0xff] %v883_v31  ;;  %v893_v17 = vmul.f32 0.5, %v4867_v10  ;;  %v4868_v31 = vld [vmem:[#allocation36_spill] sm:$0xff]  ;;  %v899_v10 = vmul.f32 0.5, %v4873_v59  ;;  %v4874_v19 = vld [vmem:[#allocation42_spill] sm:$0xff] }
  0x94   : > { %948 = vst [vmem:[%s3125_s26 + $0x138] sm:$0xff] %v884_v9  ;;  %949 = vst [vmem:[%s3125_s26 + $0x140] sm:$0xff] %v885_v23  ;;  %v894_v9 = vmul.f32 0.5, %v4868_v31  ;;  %v4871_v23 = vld [vmem:[#allocation39_spill] sm:$0xff]  ;;  %v900_v31 = vmul.f32 0.5, %v4874_v19 }
  0x95   : > { %950 = vst [vmem:[%s3125_s26 + $0x148] sm:$0xff] %v886_v32  ;;  %951 = vst [vmem:[%s3125_s26 + $0x150] sm:$0xff] %v887_v33  ;;  %v897_v32 = vmul.f32 0.5, %v4871_v23  ;;  %v4872_v33 = vld [vmem:[#allocation40_spill] sm:$0xff] }
  0x96   : > { %952 = vst [vmem:[%s3125_s26 + $0x158] sm:$0xff] %v888_v40  ;;  %953 = vst [vmem:[%s3125_s26 + $0x160] sm:$0xff] %v889_v53  ;;  %v898_v40 = vmul.f32 0.5, %v4872_v33  ;;  %v4875_v53 = vld [vmem:[#allocation43_spill] sm:$0xff]  ;;  %v4877_v33 = vld [vmem:[#allocation46_spill] sm:$0xff] }
  0x97   : > { %954 = vst [vmem:[%s3125_s26 + $0x168] sm:$0xff] %v890_v54  ;;  %955 = vst [vmem:[%s3125_s26 + $0x170] sm:$0xff] %v891_v58  ;;  %v901_v54 = vmul.f32 0.5, %v4875_v53  ;;  %v902_v58 = vmul.f32 0.5, %v3073_v5  ;;  %v904_v60 = vmul.f32 0.5, %v4877_v33  ;;  %v908_v5 = vmul.f32 0.5, %v3109_v46 }
  0x98   : > { %956 = vst [vmem:[%s3125_s26 + $0x178] sm:$0xff] %v892_v45  ;;  %957 = vst [vmem:[%s3125_s26 + $0x180] sm:$0xff] %v893_v17  ;;  %v4876_v45 = vld [vmem:[#allocation45_spill] sm:$0xff] }
  0x99   : > { %958 = vst [vmem:[%s3125_s26 + $0x188] sm:$0xff] %v894_v9  ;;  %959 = vst [vmem:[%s3125_s26 + $0x190] sm:$0xff] %v895_v4  ;;  %v903_v23 = vmul.f32 0.5, %v4876_v45  ;;  %v905_v4 = vmul.f32 0.5, %v3091_v30  ;;  %v907_v9 = vmul.f32 0.5, %v3097_v44 }
  0x9a   : > { %960 = vst [vmem:[%s3125_s26 + $0x198] sm:$0xff] %v896_v18  ;;  %961 = vst [vmem:[%s3125_s26 + $0x1a0] sm:$0xff] %v897_v32  ;;  %v4878_v18 = vld [vmem:[#allocation47_spill] sm:$0xff]  ;;  %v4890_v32 = vld [vmem:[#allocation30_spill] sm:$0xff] }
  0x9b   : > { %962 = vst [vmem:[%s3125_s26 + $0x1a8] sm:$0xff] %v898_v40  ;;  %963 = vst [vmem:[%s3125_s26 + $0x1b0] sm:$0xff] %v899_v10  ;;  %v906_v17 = vmul.f32 0.5, %v4878_v18 }
  0x9c   : > { %964 = vst [vmem:[%s3125_s26 + $0x1b8] sm:$0xff] %v900_v31  ;;  %965 = vst [vmem:[%s3125_s26 + $0x1c0] sm:$0xff] %v901_v54  ;;  %v511_v54 = vadd.f32 5.0, %v4869_v61 }
  0x9d   : > { %966 = vst [vmem:[%s3125_s26 + $0x1c8] sm:$0xff] %v902_v58  ;;  %967 = vst [vmem:[%s3125_s26 + $0x1d0] sm:$0xff] %v903_v23  ;;  %v461_v58 = vadd.f32 5.0, %v2736_v0  ;;  %v467_v0 = vadd.f32 5.0, %v2762_v13 }
  0x9e   : > { %968 = vst [vmem:[%s3125_s26 + $0x1d8] sm:$0xff] %v904_v60  ;;  %969 = vst [vmem:[%s3125_s26 + $0x1e0] sm:$0xff] %v905_v4  ;;  %v4816_v60 = vmov 0   ;;  %v462_v4 = vadd.f32 5.0, %v2739_v1 }
  0x9f   : > { %970 = vst [vmem:[%s3125_s26 + $0x1e8] sm:$0xff] %v906_v17  ;;  %971 = vst [vmem:[%s3125_s26 + $0x1f0] sm:$0xff] %v907_v9  ;;  %v463_v17 = vadd.f32 5.0, %v2742_v2  ;;  %v464_v9 = vadd.f32 5.0, %v2748_v6  ;;  %v468_v6 = vadd.f32 5.0, %v2765_v14  ;;  %v471_v14 = vadd.f32 5.0, %v2785_v21 }
  0xa0   : > { %972 = vst [vmem:[%s3125_s26 + $0x1f8] sm:$0xff] %v908_v5  ;;  %vm1165_vm4 = vmpackc.low %vm1102_vm1, %vm1101_vm0  ;;  %vm1112_vm0 = vcmp.gt.f32.partialorder %v2788_v22, 2.0  ;;  %v475_v21 = vadd.f32 5.0, %v2809_v29  ;;  %v4908_v2 = vld [vmem:[#allocation36_spill] sm:$0xff] }
  0xa1   : > { %vm1166_vm7 = vmpackc.low %vm1104_vm3, %vm1103_vm2  ;;  %vm1113_vm3 = vcmp.gt.f32.partialorder %v2803_v27, 2.0  ;;  %525 = vst [vmem:[%s3345_s23] sm:$0xff] %v461_v58  ;;  %v4896_v58 = vld [vmem:[#allocation31_spill] sm:$0xff] }
  0xa2   : > { %vm1167_vm10 = vmpackc.even %vm1166_vm7, %vm1165_vm4  ;;  %vm1114_vm4 = vcmp.gt.f32.partialorder %v2806_v28, 2.0  ;;  %vm1116_vm7 = vcmp.gt.f32.partialorder %v2821_v34, 2.0  ;;  %526 = vst [vmem:[%s3345_s23 + $0x8] sm:$0xff] %v462_v4  ;;  %v4897_v4 = vld [vmem:[#allocation32_spill] sm:$0xff] }
  0xa3   : > { %v1213_v10 = vsel %vm1167_vm10, 16843009, %v4816_v60  ;;  %vm1168_vm11 = vmpackc.low %vm1106_vm6, %vm1105_vm5  ;;  %vm1115_vm6 = vcmp.gt.f32.partialorder %v2809_v29, 2.0  ;;  %vm1117_vm10 = vcmp.gt.f32.partialorder %v2824_v35, 2.0  ;;  %527 = vst [vmem:[%s3345_s23 + $0x10] sm:$0xff] %v463_v17  ;;  %v479_v29 = vadd.f32 5.0, %v2839_v41 }
  0xa4   : > { %1229 = vst [vmem:[%s3267_s13] sm:$0xff] %v1213_v10  ;;  %vm1169_vm14 = vmpackc.low %vm1108_vm9, %vm1107_vm8  ;;  %v465_v10 = vadd.f32 5.0, %v2751_v7  ;;  %v469_v7 = vadd.f32 5.0, %v2768_v15  ;;  %v472_v15 = vadd.f32 5.0, %v2788_v22  ;;  %v476_v22 = vadd.f32 5.0, %v2821_v34 }
  0xa5   : > { %vm1170_vm1 = vmpackc.even %vm1169_vm14, %vm1168_vm11  ;;  %vm1118_vm11 = vcmp.gt.f32.partialorder %v2827_v36, 2.0  ;;  %vm1120_vm14 = vcmp.gt.f32.partialorder %v2842_v42, 2.0  ;;  %528 = vst [vmem:[%s3345_s23 + $0x18] sm:$0xff] %v464_v9  ;;  %v480_v34 = vadd.f32 5.0, %v2842_v42  ;;  %v483_v42 = vadd.f32 5.0, %v2860_v49  ;;  %v4898_v9 = vld [vmem:[#allocation33_spill] sm:$0xff] }
  0xa6   : > { %v1214_v5 = vsel %vm1170_vm1, 16843009, %v4816_v60  ;;  %vm1171_vm2 = vmpackc.low %vm1110_vm13, %vm1109_vm12  ;;  %vm1119_vm13 = vcmp.gt.f32.partialorder %v2839_v41, 2.0  ;;  %vm1122_vm1 = vcmp.gt.f32.partialorder %v2857_v48, 2.0  ;;  %529 = vst [vmem:[%s3345_s23 + $0x20] sm:$0xff] %v465_v10  ;;  %v482_v41 = vadd.f32 5.0, %v2857_v48 }
  0xa7   : > { %1230 = vst [vmem:[%s3267_s13 + $0x8] sm:$0xff] %v1214_v5  ;;  %vm1172_vm5 = vmpackc.low %vm1112_vm0, %vm1111_vm15  ;;  %vm1121_vm0 = vcmp.gt.f32.partialorder %v2845_v43, 2.0  ;;  %v466_v5 = vadd.f32 5.0, %v2754_v8  ;;  %v470_v8 = vadd.f32 5.0, %v2782_v20  ;;  %v473_v20 = vadd.f32 5.0, %v2803_v27  ;;  %v4899_v10 = vld [vmem:[#allocation34_spill] sm:$0xff] }
  0xa8   : > { %vm1173_vm8 = vmpackc.even %vm1172_vm5, %vm1171_vm2  ;;  %vm1137_vm5 = vcmp.gt.f32.partialorder %v2947_v37, 2.0  ;;  %531 = vst [vmem:[%s3345_s23 + $0x30] sm:$0xff] %v467_v0  ;;  %v477_v27 = vadd.f32 5.0, %v2824_v35  ;;  %v481_v35 = vadd.f32 5.0, %v2845_v43  ;;  %v484_v43 = vadd.f32 5.0, %v2863_v50 }
  0xa9   : > { %v1215_v31 = vsel %vm1173_vm8, 16843009, %v4816_v60  ;;  %vm1174_vm9 = vmpackc.low %vm1114_vm4, %vm1113_vm3  ;;  %vm1123_vm3 = vcmp.gt.f32.partialorder %v2860_v49, 2.0  ;;  %vm1127_vm8 = vcmp.gt.f32.partialorder %v2881_v57, 2.0  ;;  %vm4883_vm4 = vcmp.gt.f32.partialorder %v2863_v50, 2.0  ;;  %530 = vst [vmem:[%s3345_s23 + $0x28] sm:$0xff] %v466_v5 }
  0xaa   : > { %1231 = vst [vmem:[%s3267_s13 + $0x10] sm:$0xff] %v1215_v31  ;;  %vm1175_vm12 = vmpackc.low %vm1116_vm7, %vm1115_vm6  ;;  %vm1126_vm7 = vcmp.gt.f32.partialorder %v2878_v56, 2.0  ;;  %v474_v31 = vadd.f32 5.0, %v2806_v28  ;;  %v478_v28 = vadd.f32 5.0, %v2827_v36  ;;  %v485_v17 = vadd.f32 5.0, %v2875_v55 }
  0xab   : > { %vm1176_vm15 = vmpackc.even %vm1175_vm12, %vm1174_vm9  ;;  %vm1128_vm9 = vcmp.gt.f32.partialorder %v2893_v62, 2.0  ;;  %vm1130_vm12 = vcmp.gt.f32.partialorder %v2899_v3, 2.0  ;;  %532 = vst [vmem:[%s3345_s23 + $0x38] sm:$0xff] %v468_v6  ;;  %v486_v48 = vadd.f32 5.0, %v2878_v56  ;;  %v487_v49 = vadd.f32 5.0, %v2881_v57 }
  0xac   : > { %v1216_v23 = vsel %vm1176_vm15, 16843009, %v4816_v60  ;;  %vm3287_vm2 = vmpackc.low %vm1118_vm11, %vm1117_vm10  ;;  %vm1129_vm10 = vcmp.gt.f32.partialorder %v2896_v63, 2.0  ;;  %vm1131_vm15 = vcmp.gt.f32.partialorder %v2911_v11, 2.0  ;;  %533 = vst [vmem:[%s3345_s23 + $0x40] sm:$0xff] %v469_v7  ;;  %v488_v50 = vadd.f32 5.0, %v2893_v62 }
  0xad   : > { %1232 = vst [vmem:[%s3267_s13 + $0x18] sm:$0xff] %v1216_v23  ;;  %vm1178_vm6 = vmpackc.low %vm1120_vm14, %vm1119_vm13  ;;  %vm1134_vm14 = vcmp.gt.f32.partialorder %v2929_v24, 2.0  ;;  %v4889_v23 = vld [vmem:[#allocation29_spill] sm:$0xff]  ;;  %v490_v56 = vadd.f32 5.0, %v2899_v3  ;;  %v491_v57 = vadd.f32 5.0, %v2911_v11  ;;  %v492_v62 = vadd.f32 5.0, %v2914_v12 }
  0xae   : > { %vm1179_vm11 = vmpackc.even %vm1178_vm6, %vm3287_vm2  ;;  %vm1139_vm6 = vcmp.gt.f32.partialorder %v2953_v39, 2.0  ;;  %vm1140_vm2 = vcmp.gt.f32.partialorder %v2965_v47, 2.0  ;;  %534 = vst [vmem:[%s3345_s23 + $0x48] sm:$0xff] %v470_v8  ;;  %v493_v3 = vadd.f32 5.0, %v2917_v16  ;;  %v494_v11 = vadd.f32 5.0, %v2929_v24  ;;  %v4909_v7 = vld [vmem:[#allocation38_spill] sm:$0xff] }
  0xaf   : > { %v1217_v40 = vsel %vm1179_vm11, 16843009, %v4816_v60  ;;  %vm3310_vm13 = vmpackc.low %vm1122_vm1, %vm1121_vm0  ;;  %vm1138_vm0 = vcmp.gt.f32.partialorder %v2950_v38, 2.0  ;;  %535 = vst [vmem:[%s3345_s23 + $0x50] sm:$0xff] %v471_v14  ;;  %v496_v6 = vadd.f32 5.0, %v2935_v26  ;;  %v498_v24 = vadd.f32 5.0, %v2950_v38 }
  0xb0   : > { %1233 = vst [vmem:[%s3267_s13 + $0x20] sm:$0xff] %v1217_v40  ;;  %vm1181_vm11 = vmpackc.low %vm4883_vm4, %vm1123_vm3  ;;  %vm4884_vm3 = vcmp.gt.f32.partialorder %v2875_v55, 2.0  ;;  %v489_v55 = vadd.f32 5.0, %v2896_v63  ;;  %v501_v14 = vadd.f32 5.0, %v2968_v51  ;;  %v4914_v38 = vld [vmem:[#allocation39_spill] sm:$0xff]  ;;  %v523_v0 = vadd.f32 5.0, %v3097_v44 }
  0xb1   : > { %vm1182_vm1 = vmpackc.even %vm1181_vm11, %vm3310_vm13  ;;  %vm1141_vm13 = vcmp.gt.f32.partialorder %v2968_v51, 2.0  ;;  %vm1142_vm11 = vcmp.gt.f32.partialorder %v2971_v52, 2.0  ;;  %536 = vst [vmem:[%s3345_s23 + $0x58] sm:$0xff] %v472_v15  ;;  %v502_v15 = vadd.f32 5.0, %v2971_v52  ;;  %v513_v36 = vadd.f32 5.0, %v4914_v38  ;;  %v4920_v52 = vld [vmem:[#allocation44_spill] sm:$0xff] }
  0xb2   : > { %v1218_v1 = vsel %vm1182_vm1, 16843009, %v4816_v60  ;;  %vm3340_vm4 = vmpackc.low %vm1126_vm7, %vm4884_vm3  ;;  %vm1144_vm1 = vcmp.gt.f32.partialorder %v4890_v32, 2.0  ;;  %537 = vst [vmem:[%s3345_s23 + $0x60] sm:$0xff] %v473_v20  ;;  %v503_v20 = vadd.f32 5.0, %v4889_v23 }
  0xb3   : > { %1234 = vst [vmem:[%s3267_s13 + $0x28] sm:$0xff] %v1218_v1  ;;  %vm3358_vm7 = vmpackc.low %vm1128_vm9, %vm1127_vm8  ;;  %vm1143_vm9 = vcmp.gt.f32.partialorder %v4889_v23, 2.0  ;;  %v4907_v1 = vld [vmem:[#allocation35_spill] sm:$0xff]  ;;  %v516_v23 = vadd.f32 5.0, %v4874_v19 }
  0xb4   : > { %vm1185_vm8 = vmpackc.even %vm3358_vm7, %vm3340_vm4  ;;  %538 = vst [vmem:[%s3345_s23 + $0x68] sm:$0xff] %v474_v31  ;;  %vm4893_vm4 = vcmp.gt.f32.partialorder %v2914_v12, 2.0  ;;  %vm1146_vm7 = vcmp.gt.f32.partialorder %v4897_v4, 2.0  ;;  %v495_v12 = vadd.f32 5.0, %v2932_v25  ;;  %v4915_v31 = vld [vmem:[#allocation40_spill] sm:$0xff] }
  0xb5   : > { %v1219_v40 = vsel %vm1185_vm8, 16843009, %v4816_v60  ;;  %vm3390_vm3 = vmpackc.low %vm1130_vm12, %vm1129_vm10  ;;  %vm1145_vm12 = vcmp.gt.f32.partialorder %v4896_v58, 2.0  ;;  %539 = vst [vmem:[%s3345_s23 + $0x70] sm:$0xff] %v475_v21  ;;  %vm1152_vm8 = vcmp.gt.f32.partialorder %v4909_v7, 2.0  ;;  %v504_v21 = vadd.f32 5.0, %v4890_v32 }
  0xb6   : > { %1235 = vst [vmem:[%s3267_s13 + $0x30] sm:$0xff] %v1219_v40  ;;  %vm3406_vm10 = vmpackc.low %vm4893_vm4, %vm1131_vm15  ;;  %vm4904_vm4 = vcmp.gt.f32.partialorder %v2935_v26, 2.0  ;;  %v500_v26 = vadd.f32 5.0, %v2965_v47  ;;  %v506_v47 = vadd.f32 5.0, %v4897_v4  ;;  %v510_v40 = vadd.f32 5.0, %v4908_v2 }
  0xb7   : > { %540 = vst [vmem:[%s3345_s23 + $0x78] sm:$0xff] %v476_v22  ;;  %541 = vst [vmem:[%s3345_s23 + $0x80] sm:$0xff] %v477_v27  ;;  %v507_v22 = vadd.f32 5.0, %v4898_v9  ;;  %v508_v27 = vadd.f32 5.0, %v4899_v10  ;;  %v517_v32 = vadd.f32 5.0, %v4875_v53 }
  0xb8   : > { %542 = vst [vmem:[%s3345_s23 + $0x88] sm:$0xff] %v478_v28  ;;  %vm1188_vm15 = vmpackc.even %vm3406_vm10, %vm3390_vm3  ;;  %vm4900_vm3 = vcmp.gt.f32.partialorder %v2917_v16, 2.0  ;;  %v497_v16 = vadd.f32 5.0, %v2947_v37  ;;  %v509_v28 = vadd.f32 5.0, %v4907_v1 }
  0xb9   : > { %543 = vst [vmem:[%s3345_s23 + $0x90] sm:$0xff] %v479_v29  ;;  %544 = vst [vmem:[%s3345_s23 + $0x98] sm:$0xff] %v480_v34  ;;  %v1220_v5 = vsel %vm1188_vm15, 16843009, %v4816_v60  ;;  %vm4903_vm15 = vcmp.gt.f32.partialorder %v2932_v25, 2.0  ;;  %v499_v25 = vadd.f32 5.0, %v2953_v39 }
  0xba   : > { %545 = vst [vmem:[%s3345_s23 + $0xa0] sm:$0xff] %v481_v35  ;;  %vm3438_vm10 = vmpackc.low %vm1134_vm14, %vm4900_vm3  ;;  %vm1149_vm3 = vcmp.gt.f32.partialorder %v4907_v1, 2.0  ;;  %v505_v39 = vadd.f32 5.0, %v4896_v58  ;;  %v512_v35 = vadd.f32 5.0, %v4909_v7  ;;  %v524_v58 = vadd.f32 5.0, %v3109_v46 }
  0xbb   : > { %546 = vst [vmem:[%s3345_s23 + $0xa8] sm:$0xff] %v482_v41  ;;  %547 = vst [vmem:[%s3345_s23 + $0xb0] sm:$0xff] %v483_v42  ;;  %v514_v41 = vadd.f32 5.0, %v4915_v31  ;;  %v515_v42 = vadd.f32 5.0, %v4873_v59 }
  0xbc   : > { %548 = vst [vmem:[%s3345_s23 + $0xb8] sm:$0xff] %v484_v43  ;;  %549 = vst [vmem:[%s3345_s23 + $0xc0] sm:$0xff] %v485_v17  ;;  %v518_v43 = vadd.f32 5.0, %v4920_v52  ;;  %v519_v17 = vadd.f32 5.0, %v4876_v45 }
  0xbd   : > { %1236 = vst [vmem:[%s3267_s13 + $0x38] sm:$0xff] %v1220_v5  ;;  %vm3454_vm14 = vmpackc.low %vm4904_vm4, %vm4903_vm15  ;;  %vm1151_vm15 = vcmp.gt.f32.partialorder %v4869_v61, 2.0 }
  0xbe   : > { %550 = vst [vmem:[%s3345_s23 + $0xc8] sm:$0xff] %v486_v48  ;;  %551 = vst [vmem:[%s3345_s23 + $0xd0] sm:$0xff] %v487_v49  ;;  %v520_v48 = vadd.f32 5.0, %v4877_v33  ;;  %v521_v49 = vadd.f32 5.0, %v3091_v30 }
  0xbf   : > { %552 = vst [vmem:[%s3345_s23 + $0xd8] sm:$0xff] %v488_v50  ;;  %553 = vst [vmem:[%s3345_s23 + $0xe0] sm:$0xff] %v489_v55  ;;  %v522_v50 = vadd.f32 5.0, %v4878_v18 }
  0xc0   : > { %vm1191_vm4 = vmpackc.even %vm3454_vm14, %vm3438_vm10  ;;  %554 = vst [vmem:[%s3345_s23 + $0xe8] sm:$0xff] %v490_v56  ;;  %vm1154_vm14 = vcmp.gt.f32.partialorder %v4915_v31, 2.0  ;;  %v3599_v56 = vld [vmem:[%s2729_s15] sm:$0xff] }
  0xc1   : > { %555 = vst [vmem:[%s3345_s23 + $0xf0] sm:$0xff] %v491_v57  ;;  %556 = vst [vmem:[%s3345_s23 + $0xf8] sm:$0xff] %v492_v62  ;;  %v1221_v8 = vsel %vm1191_vm4, 16843009, %v4816_v60  ;;  %vm1156_vm4 = vcmp.gt.f32.partialorder %v4874_v19, 2.0  ;;  %v717_v4 = vmul.f32 2.0, %v3599_v56 }
  0xc2   : > { %vm3486_vm10 = vmpackc.low %vm1138_vm0, %vm1137_vm5  ;;  %557 = vst [vmem:[%s3345_s23 + $0x100] sm:$0xff] %v493_v3  ;;  %vm1153_vm0 = vcmp.gt.f32.partialorder %v4914_v38, 2.0  ;;  %v3625_v62 = vld [vmem:[%s2729_s15 + $0x8] sm:$0xff]  ;;  %v3633_v3 = vld [vmem:[%s2729_s15 + $0x18] sm:$0xff] }
  0xc3   : > { %558 = vst [vmem:[%s3345_s23 + $0x108] sm:$0xff] %v494_v11  ;;  %559 = vst [vmem:[%s3345_s23 + $0x110] sm:$0xff] %v495_v12  ;;  %v720_v11 = vmul.f32 2.0, %v3633_v3  ;;  %v3637_v12 = vld [vmem:[%s2729_s15 + $0x20] sm:$0xff] }
  0xc4   : > { %560 = vst [vmem:[%s3345_s23 + $0x118] sm:$0xff] %v496_v6  ;;  %1237 = vst [vmem:[%s3267_s13 + $0x40] sm:$0xff] %v1221_v8  ;;  %v721_v6 = vmul.f32 2.0, %v3637_v12  ;;  %v3663_v8 = vld [vmem:[%s2729_s15 + $0x38] sm:$0xff] }
  0xc5   : > { %vm3502_vm5 = vmpackc.low %vm1140_vm2, %vm1139_vm6  ;;  %561 = vst [vmem:[%s3345_s23 + $0x120] sm:$0xff] %v497_v16  ;;  %vm1155_vm6 = vcmp.gt.f32.partialorder %v4873_v59, 2.0  ;;  %v3655_v16 = vld [vmem:[%s2729_s15 + $0x28] sm:$0xff]  ;;  %v724_v13 = vmul.f32 2.0, %v3663_v8 }
  0xc6   : > { %562 = vst [vmem:[%s3345_s23 + $0x128] sm:$0xff] %v498_v24  ;;  %563 = vst [vmem:[%s3345_s23 + $0x130] sm:$0xff] %v499_v25  ;;  %v722_v24 = vmul.f32 2.0, %v3655_v16  ;;  %v3659_v25 = vld [vmem:[%s2729_s15 + $0x30] sm:$0xff] }
  0xc7   : > { %564 = vst [vmem:[%s3345_s23 + $0x138] sm:$0xff] %v500_v26  ;;  %vm1194_vm2 = vmpackc.even %vm3502_vm5, %vm3486_vm10  ;;  %vm1158_vm5 = vcmp.gt.f32.partialorder %v4920_v52, 2.0  ;;  %v723_v26 = vmul.f32 2.0, %v3659_v25 }
  0xc8   : > { %565 = vst [vmem:[%s3345_s23 + $0x140] sm:$0xff] %v501_v14  ;;  %566 = vst [vmem:[%s3345_s23 + $0x148] sm:$0xff] %v502_v15  ;;  %v1222_v29 = vsel %vm1194_vm2, 16843009, %v4816_v60  ;;  %v3667_v14 = vld [vmem:[%s2729_s15 + $0x40] sm:$0xff] }
  0xc9   : > { %567 = vst [vmem:[%s3345_s23 + $0x150] sm:$0xff] %v503_v20  ;;  %vm3534_vm10 = vmpackc.low %vm1142_vm11, %vm1141_vm13  ;;  %vm1157_vm11 = vcmp.gt.f32.partialorder %v4875_v53, 2.0  ;;  %v725_v15 = vmul.f32 2.0, %v3667_v14 }
  0xca   : > { %568 = vst [vmem:[%s3345_s23 + $0x158] sm:$0xff] %v504_v21  ;;  %569 = vst [vmem:[%s3345_s23 + $0x160] sm:$0xff] %v505_v39 }
  0xcb   : > { %570 = vst [vmem:[%s3345_s23 + $0x168] sm:$0xff] %v506_v47  ;;  %571 = vst [vmem:[%s3345_s23 + $0x170] sm:$0xff] %v507_v22 }
  0xcc   : > { %1238 = vst [vmem:[%s3267_s13 + $0x48] sm:$0xff] %v1222_v29  ;;  %vm3553_vm13 = vmpackc.low %vm1144_vm1, %vm1143_vm9  ;;  %vm1159_vm1 = vcmp.gt.f32.partialorder %v4876_v45, 2.0 }
  0xcd   : > { %572 = vst [vmem:[%s3345_s23 + $0x178] sm:$0xff] %v508_v27  ;;  %573 = vst [vmem:[%s3345_s23 + $0x180] sm:$0xff] %v509_v28 }
  0xce   : > { %574 = vst [vmem:[%s3345_s23 + $0x188] sm:$0xff] %v510_v40  ;;  %575 = vst [vmem:[%s3345_s23 + $0x190] sm:$0xff] %v511_v54 }
  0xcf   : > { %vm1197_vm9 = vmpackc.even %vm3553_vm13, %vm3534_vm10  ;;  %576 = vst [vmem:[%s3345_s23 + $0x198] sm:$0xff] %v512_v35 }
  0xd0   : > { %577 = vst [vmem:[%s3345_s23 + $0x1a0] sm:$0xff] %v513_v36  ;;  %578 = vst [vmem:[%s3345_s23 + $0x1a8] sm:$0xff] %v514_v41  ;;  %v1223_v55 = vsel %vm1197_vm9, 16843009, %v4816_v60  ;;  %vm1161_vm9 = vcmp.gt.f32.partialorder %v3091_v30, 2.0 }
  0xd1   : > { %vm3588_vm10 = vmpackc.low %vm1146_vm7, %vm1145_vm12  ;;  %579 = vst [vmem:[%s3345_s23 + $0x1b0] sm:$0xff] %v515_v42  ;;  %vm4923_vm12 = vcmp.gt.f32.partialorder %v4898_v9, 2.0  ;;  %vm4924_vm7 = vcmp.gt.f32.partialorder %v4899_v10, 2.0  ;;  %v718_v9 = vmul.f32 2.0, %v3625_v62  ;;  %v3629_v10 = vld [vmem:[%s2729_s15 + $0x10] sm:$0xff] }
  0xd2   : > { %580 = vst [vmem:[%s3345_s23 + $0x1b8] sm:$0xff] %v516_v23  ;;  %581 = vst [vmem:[%s3345_s23 + $0x1c0] sm:$0xff] %v517_v32  ;;  %v719_v63 = vmul.f32 2.0, %v3629_v10 }
  0xd3   : > { %582 = vst [vmem:[%s3345_s23 + $0x1c8] sm:$0xff] %v518_v43  ;;  %1239 = vst [vmem:[%s3267_s13 + $0x50] sm:$0xff] %v1223_v55 }
  0xd4   : > { %vm3614_vm13 = vmpackc.low %vm4924_vm7, %vm4923_vm12  ;;  %583 = vst [vmem:[%s3345_s23 + $0x1d0] sm:$0xff] %v519_v17 }
  0xd5   : > { %584 = vst [vmem:[%s3345_s23 + $0x1d8] sm:$0xff] %v520_v48  ;;  %585 = vst [vmem:[%s3345_s23 + $0x1e0] sm:$0xff] %v521_v49 }
  0xd6   : > { %586 = vst [vmem:[%s3345_s23 + $0x1e8] sm:$0xff] %v522_v50  ;;  %vm1200_vm12 = vmpackc.even %vm3614_vm13, %vm3588_vm10 }
  0xd7   : > { %587 = vst [vmem:[%s3345_s23 + $0x1f0] sm:$0xff] %v523_v0  ;;  %588 = vst [vmem:[%s3345_s23 + $0x1f8] sm:$0xff] %v524_v58 }
  0xd8   : > { %781 = vst [vmem:[%s3651_s10] sm:$0xff] %v717_v4  ;;  %4927 = vst [vmem:[#allocation37_spill] sm:$0xff] %v3667_v14 }
  0xd9   : > { %2290 = shalt.err (!%p2287_p2)
}
  0xda   : > { %s2291_s19 = scalar_lea.hbm %s3606_s0, 8192  ;;  %s2295_s20 = scalar_lea.hbm %s4752_s2, 16384 }
  0xdb   : > { %p2292_p4 = scmp.ne.s32.totalorder %s3606_s0, %s2291_s19  ;;  %p2296_p9 = scmp.lt.u32.totalorder %s3606_s0, %s4752_s2 }
  0xdc   : > { %p2297_p1 = scmp.lt.u32.totalorder %s2295_s20, %s2291_s19  ;;  %p2299_p6 = scmp.lt.u32.totalorder %s2291_s19, %s3606_s0 }
  0xdd   : > { %p2293_p5 = pnand %p2292_p4, %p4928_p11 }
  0xde   : > { %p2298_p3 = por %p2297_p1, %p2296_p9 }
  0xdf   : > { %p2294_p7 = pneg %p2293_p5 }
  0xe0   : > { %p2300_p12 = por %p2299_p6, %p2298_p3 }
  0xe2   : > { %p2301_p13 = pnand %p2300_p12, %p2294_p7 }
  0xe4   : > { %2304 = shalt.err (!%p2301_p13)
}
  0xe5   : > { %s4806_s28 = smov 128   ;;  %s2563_s30 = smov 8   ;;  %v1224_v20 = vsel %vm1200_vm12, 16843009, %v4816_v60  ;;  %vm4930_vm2 = vcmp.gt.f32.partialorder %v4908_v2, 2.0  ;;  %782 = vst [vmem:[%s3651_s10 + $0x8] sm:$0xff] %v718_v9 }
  0xe6   : > { %s4929_s11 = scalar_lea.sflag [#allocation7], %s3546_s22  ;;  %vm3707_vm7 = vmpackc.low %vm4930_vm2, %vm1149_vm3  ;;  %783 = vst [vmem:[%s3651_s10 + $0x10] sm:$0xff] %v719_v63  ;;  %v3716_v21 = vld [vmem:[%s2729_s15 + $0x48] sm:$0xff]  ;;  %v3720_v1 = vld [vmem:[%s2729_s15 + $0x50] sm:$0xff]  ;;  %s3760_s18 = scalar_lea.hbm %s4754_s4, %s3568_s21 }
  0xe7   : > { %2100 = dma.vmem_to_hbm [thread:$0]  (%p4928_p11), %s3640_s14, 8192, %s3606_s0, %s4929_s11, %s4806_s28, %s4806_s28, %s2563_s30   ;;  %4933 = vst [vmem:[#allocation41_spill] sm:$0xff] %v3716_v21  ;;  %v726_v39 = vmul.f32 2.0, %v3716_v21  ;;  %4934 = vst [vmem:[#allocation42_spill] sm:$0xff] %v3720_v1  ;;  %v727_v2 = vmul.f32 2.0, %v3720_v1 }
  0xe8   : > { %784 = vst [vmem:[%s3651_s10 + $0x18] sm:$0xff] %v720_v11  ;;  %785 = vst [vmem:[%s3651_s10 + $0x20] sm:$0xff] %v721_v6  ;;  %v3724_v47 = vld [vmem:[%s2729_s15 + $0x58] sm:$0xff]  ;;  %v3741_v28 = vld [vmem:[%s2729_s15 + $0x60] sm:$0xff]  ;;  %s1630_s19 = sshll.u32 %s3125_s26, 4  ;;  %s2564_s20 = smov [#allocation9]   ;;  %s3786_s19 = int_to_ptr.vmem [resolvable:$true] %s1630_s19 }
  0xe9   : > { %4935 = vst [vmem:[#allocation43_spill] sm:$0xff] %v3724_v47  ;;  %v728_v22 = vmul.f32 2.0, %v3724_v47  ;;  %1240 = vst [vmem:[%s3267_s13 + $0x58] sm:$0xff] %v1224_v20  ;;  %v729_v40 = vmul.f32 2.0, %v3741_v28  ;;  %v3745_v61 = vld [vmem:[%s2729_s15 + $0x68] sm:$0xff]  ;;  %v3749_v54 = vld [vmem:[%s2729_s15 + $0x70] sm:$0xff] }
  0xea   : > { %vm3732_vm3 = vmpackc.low %vm1152_vm8, %vm1151_vm15  ;;  %786 = vst [vmem:[%s3651_s10 + $0x28] sm:$0xff] %v722_v24  ;;  %v730_v7 = vmul.f32 2.0, %v3745_v61  ;;  %v731_v29 = vmul.f32 2.0, %v3749_v54  ;;  %v3753_v34 = vld [vmem:[%s2729_s15 + $0x78] sm:$0xff]  ;;  %v3771_v36 = vld [vmem:[%s2729_s15 + $0x80] sm:$0xff]  ;;  %s2305_s16 = scalar_lea.vmem %s3786_s19, 8192 }
  0xeb   : > { %787 = vst [vmem:[%s3651_s10 + $0x30] sm:$0xff] %v723_v26  ;;  %788 = vst [vmem:[%s3651_s10 + $0x38] sm:$0xff] %v724_v13  ;;  %v732_v35 = vmul.f32 2.0, %v3753_v34  ;;  %v733_v41 = vmul.f32 2.0, %v3771_v36  ;;  %v3775_v51 = vld [vmem:[%s2729_s15 + $0x88] sm:$0xff]  ;;  %v3779_v23 = vld [vmem:[%s2729_s15 + $0x90] sm:$0xff]  ;;  %p2306_p8 = scmp.ne.s32.totalorder %s3786_s19, %s2305_s16 }
  0xec   : > { %789 = vst [vmem:[%s3651_s10 + $0x40] sm:$0xff] %v725_v15  ;;  %4938 = vst [vmem:[#allocation45_spill] sm:$0xff] %v3741_v28  ;;  %v734_v42 = vmul.f32 2.0, %v3775_v51  ;;  %v735_v32 = vmul.f32 2.0, %v3779_v23  ;;  %v3783_v43 = vld [vmem:[%s2729_s15 + $0x98] sm:$0xff]  ;;  %v3802_v50 = vld [vmem:[%s2729_s15 + $0xa0] sm:$0xff] }
  0xed   : > { %4939 = vst [vmem:[#allocation46_spill] sm:$0xff] %v3745_v61  ;;  %4940 = vst [vmem:[#allocation47_spill] sm:$0xff] %v3749_v54  ;;  %v736_v17 = vmul.f32 2.0, %v3783_v43  ;;  %v737_v55 = vmul.f32 2.0, %v3802_v50  ;;  %v3806_v5 = vld [vmem:[%s2729_s15 + $0xa8] sm:$0xff]  ;;  %v3810_v38 = vld [vmem:[%s2729_s15 + $0xb0] sm:$0xff]  ;;  %p2307_p10 = pnand %p2306_p8, %p4928_p11 }
  0xee   : > { %4941 = vst [vmem:[#allocation29_spill] sm:$0xff] %v3753_v34  ;;  %vm1203_vm8 = vmpackc.even %vm3732_vm3, %vm3707_vm7  ;;  %v738_v0 = vmul.f32 2.0, %v3806_v5  ;;  %v739_v31 = vmul.f32 2.0, %v3810_v38  ;;  %s2309_s29 = sshll.u32 %s2564_s20, 4  ;;  %s2310_s29 = int_to_ptr.vmem [resolvable:$false] %s2309_s29 }
  0xef   : > { %790 = vst [vmem:[%s3651_s10 + $0x48] sm:$0xff] %v726_v39  ;;  %791 = vst [vmem:[%s3651_s10 + $0x50] sm:$0xff] %v727_v2  ;;  %v1225_v48 = vsel %vm1203_vm8, 16843009, %v4816_v60  ;;  %p2308_p0 = pneg %p2307_p10  ;;  %s2311_s11 = scalar_lea.vmem %s2310_s29, 16384 }
  0xf0   : > { %792 = vst [vmem:[%s3651_s10 + $0x58] sm:$0xff] %v728_v22  ;;  %4942 = vst [vmem:[#allocation30_spill] sm:$0xff] %v3771_v36  ;;  %p2312_p2 = scmp.lt.s32.totalorder %s3786_s19, %s2310_s29  ;;  %p2313_p4 = scmp.lt.s32.totalorder %s2311_s11, %s2305_s16 }
  0xf1   : > { %4943 = vst [vmem:[#allocation31_spill] sm:$0xff] %v3775_v51  ;;  %4944 = vst [vmem:[#allocation32_spill] sm:$0xff] %v3779_v23 }
  0xf2   : > { %4945 = vst [vmem:[#allocation33_spill] sm:$0xff] %v3783_v43  ;;  %vm3793_vm15 = vmpackc.low %vm1154_vm14, %vm1153_vm0  ;;  %p2314_p5 = por %p2313_p4, %p2312_p2 }
  0xf3   : > { %793 = vst [vmem:[%s3651_s10 + $0x60] sm:$0xff] %v729_v40  ;;  %794 = vst [vmem:[%s3651_s10 + $0x68] sm:$0xff] %v730_v7 }
  0xf4   : > { %795 = vst [vmem:[%s3651_s10 + $0x70] sm:$0xff] %v731_v29  ;;  %796 = vst [vmem:[%s3651_s10 + $0x78] sm:$0xff] %v732_v35  ;;  %p2315_p7 = pnand %p2314_p5, %p2308_p0 }
  0xf6   : > { %2318 = shalt.err (!%p2315_p7)
}
  0xf7   : > { %s2319_s0 = scalar_lea.hbm %s3760_s18, 8192  ;;  %s2323_s20 = scalar_lea.hbm %s4754_s4, 16384 }
  0xf8   : > { %p2320_p9 = scmp.ne.s32.totalorder %s3760_s18, %s2319_s0  ;;  %p2324_p6 = scmp.lt.u32.totalorder %s3760_s18, %s4754_s4 }
  0xf9   : > { %p2325_p12 = scmp.lt.u32.totalorder %s2323_s20, %s2319_s0  ;;  %p2327_p8 = scmp.lt.u32.totalorder %s2319_s0, %s3760_s18 }
  0xfa   : > { %p2321_p1 = pnand %p2320_p9, %p4928_p11 }
  0xfb   : > { %p2326_p13 = por %p2325_p12, %p2324_p6 }
  0xfc   : > { %p2322_p3 = pneg %p2321_p1 }
  0xfd   : > { %p2328_p10 = por %p2327_p8, %p2326_p13 }
  0xff   : > { %p2329_p0 = pnand %p2328_p10, %p2322_p3 }
 0x101   : > { %2332 = shalt.err (!%p2329_p0)
}
 0x102   : > { %s4948_s16 = smov 128   ;;  %s4949_s11 = scalar_lea.sflag [#allocation10], %s3546_s22  ;;  %1241 = vst [vmem:[%s3267_s13 + $0x60] sm:$0xff] %v1225_v48  ;;  %vm3845_vm0 = vmpackc.low %vm1156_vm4, %vm1155_vm6  ;;  %v3854_v4 = vld [vmem:[%s2729_s15 + $0xb8] sm:$0xff]  ;;  %v3858_v59 = vld [vmem:[%s2729_s15 + $0xc0] sm:$0xff]  ;;  %vm4954_vm4 = vcmp.gt.f32.partialorder %v4877_v33, 2.0 }
 0x103   : > { %2102 = dma.vmem_to_hbm [thread:$0]  (%p4928_p11), %s3786_s19, 8192, %s3760_s18, %s4949_s11, %s4948_s16, %s4948_s16, %s2563_s30   ;;  %v740_v57 = vmul.f32 2.0, %v3854_v4  ;;  %v741_v19 = vmul.f32 2.0, %v3858_v59  ;;  %vm1206_vm14 = vmpackc.even %vm3845_vm0, %vm3793_vm15 }
 0x104   : > { %797 = vst [vmem:[%s3651_s10 + $0x80] sm:$0xff] %v733_v41  ;;  %798 = vst [vmem:[%s3651_s10 + $0x88] sm:$0xff] %v734_v42  ;;  %v3862_v9 = vld [vmem:[%s2729_s15 + $0xc8] sm:$0xff]  ;;  %v3866_v11 = vld [vmem:[%s2729_s15 + $0xd0] sm:$0xff]  ;;  %s3893_s28 = sshll.u32 %s2637_s9, 11  ;;  %s3953_s19 = scalar_lea.hbm %s4751_s1, %s3568_s21 }
 0x105   : > { %799 = vst [vmem:[%s3651_s10 + $0x90] sm:$0xff] %v735_v32  ;;  %800 = vst [vmem:[%s3651_s10 + $0x98] sm:$0xff] %v736_v17  ;;  %v742_v63 = vmul.f32 2.0, %v3862_v9  ;;  %v743_v6 = vmul.f32 2.0, %v3866_v11  ;;  %v3877_v24 = vld [vmem:[%s2729_s15 + $0xd8] sm:$0xff]  ;;  %v3881_v13 = vld [vmem:[%s2729_s15 + $0xe0] sm:$0xff] }
 0x106   : > { %801 = vst [vmem:[%s3651_s10 + $0xa0] sm:$0xff] %v737_v55  ;;  %802 = vst [vmem:[%s3651_s10 + $0xa8] sm:$0xff] %v738_v0  ;;  %v744_v26 = vmul.f32 2.0, %v3877_v24  ;;  %v745_v15 = vmul.f32 2.0, %v3881_v13  ;;  %v3885_v20 = vld [vmem:[%s2729_s15 + $0xe8] sm:$0xff]  ;;  %v3889_v39 = vld [vmem:[%s2729_s15 + $0xf0] sm:$0xff] }
 0x107   : > { %803 = vst [vmem:[%s3651_s10 + $0xb0] sm:$0xff] %v739_v31  ;;  %v746_v37 = vmul.f32 2.0, %v3885_v20  ;;  %v747_v2 = vmul.f32 2.0, %v3889_v39  ;;  %v1226_v22 = vsel %vm1206_vm14, 16843009, %v4816_v60  ;;  %vm3900_vm6 = vmpackc.low %vm1158_vm5, %vm1157_vm11  ;;  %v3909_v40 = vld [vmem:[%s2729_s15 + $0xf8] sm:$0xff] }
 0x108   : > { %804 = vst [vmem:[%s3651_s10 + $0xb8] sm:$0xff] %v740_v57  ;;  %805 = vst [vmem:[%s3651_s10 + $0xc0] sm:$0xff] %v741_v19  ;;  %v748_v7 = vmul.f32 2.0, %v3909_v40  ;;  %v3913_v53 = vld [vmem:[%s2729_s15 + $0x100] sm:$0xff]  ;;  %v3917_v29 = vld [vmem:[%s2729_s15 + $0x108] sm:$0xff]  ;;  %s1582_s26 = sshll.u32 %s3345_s23, 4  ;;  %s3980_s26 = int_to_ptr.vmem [resolvable:$true] %s1582_s26 }
 0x109   : > { %806 = vst [vmem:[%s3651_s10 + $0xc8] sm:$0xff] %v742_v63  ;;  %807 = vst [vmem:[%s3651_s10 + $0xd0] sm:$0xff] %v743_v6  ;;  %v749_v52 = vmul.f32 2.0, %v3913_v53  ;;  %v750_v35 = vmul.f32 2.0, %v3917_v29  ;;  %v3934_v42 = vld [vmem:[%s2729_s15 + $0x110] sm:$0xff]  ;;  %v3938_v45 = vld [vmem:[%s2729_s15 + $0x118] sm:$0xff] }
 0x10a   : > { %1242 = vst [vmem:[%s3267_s13 + $0x68] sm:$0xff] %v1226_v22  ;;  %vm3925_vm11 = vmpackc.low %vm4954_vm4, %vm1159_vm1  ;;  %v751_v32 = vmul.f32 2.0, %v3934_v42  ;;  %v752_v33 = vmul.f32 2.0, %v3938_v45  ;;  %v3942_v17 = vld [vmem:[%s2729_s15 + $0x120] sm:$0xff]  ;;  %v3946_v49 = vld [vmem:[%s2729_s15 + $0x128] sm:$0xff]  ;;  %vm4957_vm1 = vcmp.gt.f32.partialorder %v4878_v18, 2.0 }
 0x10b   : > { %808 = vst [vmem:[%s3651_s10 + $0xd8] sm:$0xff] %v744_v26  ;;  %809 = vst [vmem:[%s3651_s10 + $0xe0] sm:$0xff] %v745_v15  ;;  %v753_v48 = vmul.f32 2.0, %v3942_v17  ;;  %v754_v55 = vmul.f32 2.0, %v3946_v49  ;;  %v3964_v0 = vld [vmem:[%s2729_s15 + $0x130] sm:$0xff]  ;;  %v3968_v58 = vld [vmem:[%s2729_s15 + $0x138] sm:$0xff] }
 0x10c   : > { %810 = vst [vmem:[%s3651_s10 + $0xe8] sm:$0xff] %v746_v37  ;;  %811 = vst [vmem:[%s3651_s10 + $0xf0] sm:$0xff] %v747_v2  ;;  %v755_v31 = vmul.f32 2.0, %v3964_v0  ;;  %v756_v57 = vmul.f32 2.0, %v3968_v58  ;;  %v3972_v19 = vld [vmem:[%s2729_s15 + $0x140] sm:$0xff]  ;;  %v3976_v6 = vld [vmem:[%s2729_s15 + $0x148] sm:$0xff] }
 0x10d   : > { %vm1209_vm5 = vmpackc.even %vm3925_vm11, %vm3900_vm6  ;;  %812 = vst [vmem:[%s3651_s10 + $0xf8] sm:$0xff] %v748_v7  ;;  %v757_v63 = vmul.f32 2.0, %v3972_v19  ;;  %v758_v26 = vmul.f32 2.0, %v3976_v6  ;;  %v3996_v2 = vld [vmem:[%s2729_s15 + $0x150] sm:$0xff]  ;;  %v4000_v27 = vld [vmem:[%s2729_s15 + $0x158] sm:$0xff]  ;;  %s2333_s14 = scalar_lea.vmem %s3980_s26, 8192 }
 0x10e   : > { %813 = vst [vmem:[%s3651_s10 + $0x100] sm:$0xff] %v749_v52  ;;  %814 = vst [vmem:[%s3651_s10 + $0x108] sm:$0xff] %v750_v35  ;;  %v1227_v15 = vsel %vm1209_vm5, 16843009, %v4816_v60  ;;  %v759_v22 = vmul.f32 2.0, %v3996_v2  ;;  %v760_v7 = vmul.f32 2.0, %v4000_v27  ;;  %p2334_p2 = scmp.ne.s32.totalorder %s3980_s26, %s2333_s14 }
 0x10f   : > { %vm3987_vm2 = vmpackc.low %vm4957_vm1, %vm1161_vm9  ;;  %815 = vst [vmem:[%s3651_s10 + $0x110] sm:$0xff] %v751_v32  ;;  %v4004_v30 = vld [vmem:[%s2729_s15 + $0x160] sm:$0xff]  ;;  %s2565_s20 = smov [#allocation5]  }
 0x110   : > { %816 = vst [vmem:[%s3651_s10 + $0x118] sm:$0xff] %v752_v33  ;;  %817 = vst [vmem:[%s3651_s10 + $0x120] sm:$0xff] %v753_v48  ;;  %v761_v18 = vmul.f32 2.0, %v4004_v30  ;;  %p2335_p4 = pnand %p2334_p2, %p4928_p11  ;;  %s2337_s29 = sshll.u32 %s2565_s20, 4  ;;  %s2338_s29 = int_to_ptr.vmem [resolvable:$false] %s2337_s29 }
 0x111   : > { %818 = vst [vmem:[%s3651_s10 + $0x128] sm:$0xff] %v754_v55  ;;  %s2339_s11 = scalar_lea.vmem %s2338_s29, 16384  ;;  %p2340_p7 = scmp.lt.s32.totalorder %s3980_s26, %s2338_s29 }
 0x112   : > { %p2336_p5 = pneg %p2335_p4  ;;  %p2341_p9 = scmp.lt.s32.totalorder %s2339_s11, %s2333_s14 }
 0x114   : > { %p2342_p1 = por %p2341_p9, %p2340_p7 }
 0x116   : > { %p2343_p3 = pnand %p2342_p1, %p2336_p5 }
 0x118   : > { %2346 = shalt.err (!%p2343_p3)
}
 0x119   : > { %s2347_s9 = scalar_lea.hbm %s3953_s19, 8192  ;;  %s2351_s20 = scalar_lea.hbm %s4751_s1, 16384 }
 0x11a   : > { %p2348_p6 = scmp.ne.s32.totalorder %s3953_s19, %s2347_s9  ;;  %p2352_p8 = scmp.lt.u32.totalorder %s3953_s19, %s4751_s1 }
 0x11b   : > { %p2353_p10 = scmp.lt.u32.totalorder %s2351_s20, %s2347_s9  ;;  %p2355_p2 = scmp.lt.u32.totalorder %s2347_s9, %s3953_s19 }
 0x11c   : > { %p2349_p12 = pnand %p2348_p6, %p4928_p11 }
 0x11d   : > { %p2354_p0 = por %p2353_p10, %p2352_p8 }
 0x11e   : > { %p2350_p13 = pneg %p2349_p12 }
 0x11f   : > { %p2356_p4 = por %p2355_p2, %p2354_p0 }
 0x121   : > { %p2357_p5 = pnand %p2356_p4, %p2350_p13 }
 0x123   : > { %2360 = shalt.err (!%p2357_p5)
}
 0x124   : > { %s4960_s14 = scalar_lea.sflag [#allocation4], %s2722_s25  ;;  %1243 = vst [vmem:[%s3267_s13 + $0x70] sm:$0xff] %v1227_v15  ;;  %vm4961_vm10 = vcmp.gt.f32.partialorder %v3097_v44, 2.0  ;;  %vm4962_vm13 = vcmp.gt.f32.partialorder %v3109_v46, 2.0  ;;  %819 = vst [vmem:[%s3651_s10 + $0x130] sm:$0xff] %v755_v31  ;;  %v4048_v35 = vld [vmem:[%s2729_s15 + $0x168] sm:$0xff]  ;;  %s4091_s0 = scalar_lea.hbm %s4756_s6, %s3893_s28 }
 0x125   : > { %2099 = dma.vmem_to_hbm [thread:$0]  (%p4928_p11), %s3980_s26, 8192, %s3953_s19, %s4960_s14, %s4948_s16, %s4948_s16, %s2563_s30   ;;  %vm4039_vm9 = vmpackc.low %vm4962_vm13, %vm4961_vm10  ;;  %v762_v41 = vmul.f32 2.0, %v4048_v35 }
 0x126   : > { %820 = vst [vmem:[%s3651_s10 + $0x138] sm:$0xff] %v756_v57  ;;  %821 = vst [vmem:[%s3651_s10 + $0x140] sm:$0xff] %v757_v63  ;;  %v4052_v44 = vld [vmem:[%s2729_s15 + $0x170] sm:$0xff]  ;;  %v4056_v32 = vld [vmem:[%s2729_s15 + $0x178] sm:$0xff]  ;;  %s1614_s19 = sshll.u32 %s3651_s10, 4  ;;  %s4965_s11 = sshll.u32 %s3267_s13, 4  ;;  %s4095_s11 = int_to_ptr.vmem [resolvable:$true] %s4965_s11  ;;  %s4143_s19 = int_to_ptr.vmem [resolvable:$true] %s1614_s19 }
 0x127   : > { %822 = vst [vmem:[%s3651_s10 + $0x148] sm:$0xff] %v758_v26  ;;  %v763_v46 = vmul.f32 2.0, %v4052_v44  ;;  %v764_v33 = vmul.f32 2.0, %v4056_v32  ;;  %v4060_v48 = vld [vmem:[%s2729_s15 + $0x180] sm:$0xff]  ;;  %vm1212_vm12 = vmpackc.even %vm4039_vm9, %vm3987_vm2  ;;  %v4072_v31 = vld [vmem:[%s2729_s15 + $0x188] sm:$0xff]  ;;  %s4139_s18 = scalar_lea.hbm %s4753_s3, %s3568_s21  ;;  %s2361_s29 = scalar_lea.vmem %s4095_s11, 2048 }
 0x128   : > { %v765_v55 = vmul.f32 2.0, %v4060_v48  ;;  %823 = vst [vmem:[%s3651_s10 + $0x150] sm:$0xff] %v759_v22  ;;  %824 = vst [vmem:[%s3651_s10 + $0x158] sm:$0xff] %v760_v7  ;;  %v766_v57 = vmul.f32 2.0, %v4072_v31  ;;  %v4076_v63 = vld [vmem:[%s2729_s15 + $0x190] sm:$0xff]  ;;  %v4080_v15 = vld [vmem:[%s2729_s15 + $0x198] sm:$0xff]  ;;  %p2362_p7 = scmp.ne.s32.totalorder %s4095_s11, %s2361_s29 }
 0x129   : > { %825 = vst [vmem:[%s3651_s10 + $0x160] sm:$0xff] %v761_v18  ;;  %v767_v26 = vmul.f32 2.0, %v4076_v63  ;;  %v768_v37 = vmul.f32 2.0, %v4080_v15  ;;  %v4084_v22 = vld [vmem:[%s2729_s15 + $0x1a0] sm:$0xff]  ;;  %v1228_v18 = vsel %vm1212_vm12, 16843009, %v4816_v60 }
 0x12a   : > { %v769_v7 = vmul.f32 2.0, %v4084_v22  ;;  %826 = vst [vmem:[%s3651_s10 + $0x168] sm:$0xff] %v762_v41  ;;  %827 = vst [vmem:[%s3651_s10 + $0x170] sm:$0xff] %v763_v46  ;;  %v4103_v52 = vld [vmem:[%s2729_s15 + $0x1a8] sm:$0xff]  ;;  %v4107_v23 = vld [vmem:[%s2729_s15 + $0x1b0] sm:$0xff]  ;;  %p2363_p9 = pnand %p2362_p7, %p4928_p11  ;;  %s2566_s14 = smov [#allocation12]  }
 0x12b   : > { %828 = vst [vmem:[%s3651_s10 + $0x178] sm:$0xff] %v764_v33  ;;  %829 = vst [vmem:[%s3651_s10 + $0x180] sm:$0xff] %v765_v55  ;;  %v770_v43 = vmul.f32 2.0, %v4103_v52  ;;  %v771_v51 = vmul.f32 2.0, %v4107_v23  ;;  %v4111_v36 = vld [vmem:[%s2729_s15 + $0x1b8] sm:$0xff]  ;;  %v4120_v46 = vld [vmem:[%s2729_s15 + $0x1c0] sm:$0xff] }
 0x12c   : > { %v772_v41 = vmul.f32 2.0, %v4111_v36  ;;  %1244 = vst [vmem:[%s3267_s13 + $0x78] sm:$0xff] %v1228_v18  ;;  %830 = vst [vmem:[%s3651_s10 + $0x188] sm:$0xff] %v766_v57  ;;  %v773_v33 = vmul.f32 2.0, %v4120_v46  ;;  %v4124_v55 = vld [vmem:[%s2729_s15 + $0x1c8] sm:$0xff]  ;;  %v4128_v34 = vld [vmem:[%s2729_s15 + $0x1d0] sm:$0xff]  ;;  %p2364_p1 = pneg %p2363_p9 }
 0x12d   : > { %831 = vst [vmem:[%s3651_s10 + $0x190] sm:$0xff] %v767_v26  ;;  %832 = vst [vmem:[%s3651_s10 + $0x198] sm:$0xff] %v768_v37  ;;  %v774_v60 = vmul.f32 2.0, %v4124_v55  ;;  %v775_v57 = vmul.f32 2.0, %v4128_v34  ;;  %v4132_v26 = vld [vmem:[%s2729_s15 + $0x1d8] sm:$0xff]  ;;  %v4153_v54 = vld [vmem:[%s2729_s15 + $0x1e8] sm:$0xff] }
 0x12e   : > { %833 = vst [vmem:[%s3651_s10 + $0x1a0] sm:$0xff] %v769_v7  ;;  %v776_v37 = vmul.f32 2.0, %v4132_v26  ;;  %834 = vst [vmem:[%s3651_s10 + $0x1a8] sm:$0xff] %v770_v43  ;;  %v4149_v7 = vld [vmem:[%s2729_s15 + $0x1e0] sm:$0xff]  ;;  %v778_v61 = vmul.f32 2.0, %v4153_v54  ;;  %v4157_v28 = vld [vmem:[%s2729_s15 + $0x1f0] sm:$0xff] }
 0x12f   : > { %835 = vst [vmem:[%s3651_s10 + $0x1b0] sm:$0xff] %v771_v51  ;;  %836 = vst [vmem:[%s3651_s10 + $0x1b8] sm:$0xff] %v772_v41  ;;  %v777_v18 = vmul.f32 2.0, %v4149_v7  ;;  %v779_v47 = vmul.f32 2.0, %v4157_v28  ;;  %v4161_v1 = vld [vmem:[%s2729_s15 + $0x1f8] sm:$0xff]  ;;  %s2365_s26 = sshll.u32 %s2566_s14, 4  ;;  %s2366_s26 = int_to_ptr.vmem [resolvable:$false] %s2365_s26 }
 0x130   : > { %v780_v21 = vmul.f32 2.0, %v4161_v1  ;;  %s2367_s23 = scalar_lea.vmem %s2366_s26, 4096  ;;  %p2368_p3 = scmp.lt.s32.totalorder %s4095_s11, %s2366_s26 }
 0x131   : > { %p2369_p6 = scmp.lt.s32.totalorder %s2367_s23, %s2361_s29 }
 0x133   : > { %p2370_p12 = por %p2369_p6, %p2368_p3 }
 0x135   : > { %p2371_p13 = pnand %p2370_p12, %p2364_p1 }
 0x137   : > { %2374 = shalt.err (!%p2371_p13)
}
 0x138   : > { %s2375_s15 = scalar_lea.hbm %s4091_s0, 2048  ;;  %s2379_s14 = scalar_lea.hbm %s4756_s6, 4096 }
 0x139   : > { %p2376_p8 = scmp.ne.s32.totalorder %s4091_s0, %s2375_s15  ;;  %p2380_p2 = scmp.lt.u32.totalorder %s4091_s0, %s4756_s6 }
 0x13a   : > { %p2381_p4 = scmp.lt.u32.totalorder %s2379_s14, %s2375_s15  ;;  %p2383_p7 = scmp.lt.u32.totalorder %s2375_s15, %s4091_s0 }
 0x13b   : > { %p2377_p10 = pnand %p2376_p8, %p4928_p11 }
 0x13c   : > { %p2382_p5 = por %p2381_p4, %p2380_p2 }
 0x13d   : > { %p2378_p0 = pneg %p2377_p10 }
 0x13e   : > { %p2384_p9 = por %p2383_p7, %p2382_p5 }
 0x140   : > { %p2385_p1 = pnand %p2384_p9, %p2378_p0 }
 0x142   : > { %2388 = shalt.err (!%p2385_p1)
}
 0x143   : > { %s4966_s29 = scalar_lea.sflag [#allocation13], %s3546_s22  ;;  %837 = vst [vmem:[%s3651_s10 + $0x1c0] sm:$0xff] %v773_v33  ;;  %838 = vst [vmem:[%s3651_s10 + $0x1c8] sm:$0xff] %v774_v60  ;;  %v993_v51 = vmul.f32 %v3802_v50, %v3802_v50  ;;  %v994_v43 = vmul.f32 %v3806_v5, %v3806_v5  ;;  %v995_v41 = vmul.f32 %v3810_v38, %v3810_v38 }
 0x144   : > { %2104 = dma.vmem_to_hbm [thread:$0]  (%p4928_p11), %s4095_s11, 2048, %s4091_s0, %s4966_s29, %s4948_s16, %s4948_s16, %s2563_s30   ;;  %v996_v14 = vmul.f32 %v3854_v4, %v3854_v4  ;;  %v997_v60 = vmul.f32 %v3858_v59, %v3858_v59  ;;  %v998_v33 = vmul.f32 %v3862_v9, %v3862_v9 }
 0x145   : > { %839 = vst [vmem:[%s3651_s10 + $0x1d0] sm:$0xff] %v775_v57  ;;  %840 = vst [vmem:[%s3651_s10 + $0x1d8] sm:$0xff] %v776_v37  ;;  %v999_v57 = vmul.f32 %v3866_v11, %v3866_v11  ;;  %v1000_v37 = vmul.f32 %v3877_v24, %v3877_v24  ;;  %s2567_s0 = smov [#allocation8]  }
 0x146   : > { %841 = vst [vmem:[%s3651_s10 + $0x1e0] sm:$0xff] %v777_v18  ;;  %842 = vst [vmem:[%s3651_s10 + $0x1e8] sm:$0xff] %v778_v61  ;;  %v1003_v61 = vmul.f32 %v3889_v39, %v3889_v39  ;;  %v1004_v18 = vmul.f32 %v3909_v40, %v3909_v40  ;;  %s2393_s11 = sshll.u32 %s2567_s0, 4  ;;  %s2394_s11 = int_to_ptr.vmem [resolvable:$false] %s2393_s11 }
 0x147   : > { %843 = vst [vmem:[%s3651_s10 + $0x1f0] sm:$0xff] %v779_v47  ;;  %844 = vst [vmem:[%s3651_s10 + $0x1f8] sm:$0xff] %v780_v21  ;;  %v1001_v21 = vmul.f32 %v3881_v13, %v3881_v13  ;;  %v1002_v47 = vmul.f32 %v3885_v20, %v3885_v20  ;;  %s2389_s10 = scalar_lea.vmem %s4143_s19, 8192  ;;  %s2395_s20 = scalar_lea.vmem %s2394_s11, 16384 }
 0x148   : > { %1057 = vst [vmem:[%s2791_s24 + $0xa0] sm:$0xff] %v993_v51  ;;  %1058 = vst [vmem:[%s2791_s24 + $0xa8] sm:$0xff] %v994_v43  ;;  %p2390_p3 = scmp.ne.s32.totalorder %s4143_s19, %s2389_s10  ;;  %p2396_p13 = scmp.lt.s32.totalorder %s4143_s19, %s2394_s11 }
 0x149   : > { %1059 = vst [vmem:[%s2791_s24 + $0xb0] sm:$0xff] %v995_v41  ;;  %1060 = vst [vmem:[%s2791_s24 + $0xb8] sm:$0xff] %v996_v14  ;;  %p2397_p8 = scmp.lt.s32.totalorder %s2395_s20, %s2389_s10 }
 0x14a   : > { %p2391_p6 = pnand %p2390_p3, %p4928_p11 }
 0x14b   : > { %p2398_p10 = por %p2397_p8, %p2396_p13 }
 0x14c   : > { %p2392_p12 = pneg %p2391_p6 }
 0x14e   : > { %p2399_p0 = pnand %p2398_p10, %p2392_p12 }
 0x150   : > { %2402 = shalt.err (!%p2399_p0)
}
 0x151   : > { %s2403_s23 = scalar_lea.hbm %s4139_s18, 8192  ;;  %s2407_s9 = scalar_lea.hbm %s4753_s3, 16384 }
 0x152   : > { %p2404_p2 = scmp.ne.s32.totalorder %s4139_s18, %s2403_s23  ;;  %p2408_p7 = scmp.lt.u32.totalorder %s4139_s18, %s4753_s3 }
 0x153   : > { %p2409_p9 = scmp.lt.u32.totalorder %s2407_s9, %s2403_s23  ;;  %p2411_p3 = scmp.lt.u32.totalorder %s2403_s23, %s4139_s18 }
 0x154   : > { %p2405_p4 = pnand %p2404_p2, %p4928_p11 }
 0x155   : > { %p2410_p1 = por %p2409_p9, %p2408_p7 }
 0x156   : > { %p2406_p5 = pneg %p2405_p4 }
 0x157   : > { %p2412_p6 = por %p2411_p3, %p2410_p1 }
 0x159   : > { %p2413_p12 = pnand %p2412_p6, %p2406_p5 }
 0x15b   : > { %2416 = shalt.err (!%p2413_p12)
}
 0x15c   : > { %s4967_s29 = scalar_lea.sflag [#allocation7], %s3546_s22  ;;  %1061 = vst [vmem:[%s2791_s24 + $0xc0] sm:$0xff] %v997_v60  ;;  %1062 = vst [vmem:[%s2791_s24 + $0xc8] sm:$0xff] %v998_v33  ;;  %v1005_v14 = vmul.f32 %v3913_v53, %v3913_v53  ;;  %v1006_v51 = vmul.f32 %v3917_v29, %v3917_v29  ;;  %v1007_v43 = vmul.f32 %v3934_v42, %v3934_v42  ;;  %s4354_s0 = scalar_lea.hbm %s4755_s5, %s3568_s21  ;;  %vm1245_vm7 = vcmp.lt.f32.partialorder %v3599_v56, 5.0 }
 0x15d   : > { %2101 = dma.vmem_to_hbm [thread:$0]  (%p4928_p11), %s4143_s19, 8192, %s4139_s18, %s4967_s29, %s4948_s16, %s4948_s16, %s2563_s30   ;;  %v1008_v41 = vmul.f32 %v3938_v45, %v3938_v45  ;;  %v1009_v60 = vmul.f32 %v3942_v17, %v3942_v17  ;;  %v1010_v33 = vmul.f32 %v3946_v49, %v3946_v49  ;;  %vm1246_vm3 = vcmp.lt.f32.partialorder %v3625_v62, 5.0 }
 0x15e   : > { %1063 = vst [vmem:[%s2791_s24 + $0xd0] sm:$0xff] %v999_v57  ;;  %1064 = vst [vmem:[%s2791_s24 + $0xd8] sm:$0xff] %v1000_v37  ;;  %v1011_v57 = vmul.f32 %v3964_v0, %v3964_v0  ;;  %v1012_v37 = vmul.f32 %v3968_v58, %v3968_v58  ;;  %s1646_s19 = sshll.u32 %s2791_s24, 4  ;;  %vm1247_vm8 = vcmp.lt.f32.partialorder %v3629_v10, 5.0  ;;  %vm1248_vm15 = vcmp.lt.f32.partialorder %v3633_v3, 5.0  ;;  %s4356_s19 = int_to_ptr.vmem [resolvable:$true] %s1646_s19 }
 0x15f   : > { %1065 = vst [vmem:[%s2791_s24 + $0xe0] sm:$0xff] %v1001_v21  ;;  %1066 = vst [vmem:[%s2791_s24 + $0xe8] sm:$0xff] %v1002_v47  ;;  %v1013_v21 = vmul.f32 %v3972_v19, %v3972_v19  ;;  %v1014_v47 = vmul.f32 %v3976_v6, %v3976_v6  ;;  %vm1249_vm14 = vcmp.lt.f32.partialorder %v3637_v12, 5.0  ;;  %vm1250_vm6 = vcmp.lt.f32.partialorder %v3655_v16, 5.0  ;;  %s2417_s21 = scalar_lea.vmem %s4356_s19, 8192 }
 0x160   : > { %1067 = vst [vmem:[%s2791_s24 + $0xf0] sm:$0xff] %v1003_v61  ;;  %1068 = vst [vmem:[%s2791_s24 + $0xf8] sm:$0xff] %v1004_v18  ;;  %v1015_v61 = vmul.f32 %v3996_v2, %v3996_v2  ;;  %v1016_v18 = vmul.f32 %v4000_v27, %v4000_v27  ;;  %vm1251_vm11 = vcmp.lt.f32.partialorder %v3659_v25, 5.0  ;;  %vm1252_vm5 = vcmp.lt.f32.partialorder %v3663_v8, 5.0  ;;  %p2418_p13 = scmp.ne.s32.totalorder %s4356_s19, %s2417_s21 }
 0x161   : > { %1069 = vst [vmem:[%s2791_s24 + $0x100] sm:$0xff] %v1005_v14  ;;  %1070 = vst [vmem:[%s2791_s24 + $0x108] sm:$0xff] %v1006_v51  ;;  %v1017_v14 = vmul.f32 %v4004_v30, %v4004_v30  ;;  %v1018_v51 = vmul.f32 %v4048_v35, %v4048_v35 }
 0x162   : > { %1071 = vst [vmem:[%s2791_s24 + $0x110] sm:$0xff] %v1007_v43  ;;  %1072 = vst [vmem:[%s2791_s24 + $0x118] sm:$0xff] %v1008_v41  ;;  %v1019_v43 = vmul.f32 %v4052_v44, %v4052_v44  ;;  %v1020_v41 = vmul.f32 %v4056_v32, %v4056_v32  ;;  %p2419_p8 = pnand %p2418_p13, %p4928_p11 }
 0x163   : > { %1073 = vst [vmem:[%s2791_s24 + $0x120] sm:$0xff] %v1009_v60  ;;  %1074 = vst [vmem:[%s2791_s24 + $0x128] sm:$0xff] %v1010_v33  ;;  %v1021_v60 = vmul.f32 %v4060_v48, %v4060_v48  ;;  %v1022_v33 = vmul.f32 %v4072_v31, %v4072_v31 }
 0x164   : > { %1075 = vst [vmem:[%s2791_s24 + $0x130] sm:$0xff] %v1011_v57  ;;  %1076 = vst [vmem:[%s2791_s24 + $0x138] sm:$0xff] %v1012_v37  ;;  %v1023_v57 = vmul.f32 %v4076_v63, %v4076_v63  ;;  %v1024_v37 = vmul.f32 %v4080_v15, %v4080_v15  ;;  %p2420_p10 = pneg %p2419_p8 }
 0x165   : > { %1077 = vst [vmem:[%s2791_s24 + $0x140] sm:$0xff] %v1013_v21  ;;  %1078 = vst [vmem:[%s2791_s24 + $0x148] sm:$0xff] %v1014_v47  ;;  %v1025_v21 = vmul.f32 %v4084_v22, %v4084_v22  ;;  %v1026_v47 = vmul.f32 %v4103_v52, %v4103_v52 }
 0x166   : > { %1079 = vst [vmem:[%s2791_s24 + $0x150] sm:$0xff] %v1015_v61  ;;  %1080 = vst [vmem:[%s2791_s24 + $0x158] sm:$0xff] %v1016_v18  ;;  %v1027_v61 = vmul.f32 %v4107_v23, %v4107_v23  ;;  %v1028_v18 = vmul.f32 %v4111_v36, %v4111_v36 }
 0x167   : > { %1081 = vst [vmem:[%s2791_s24 + $0x160] sm:$0xff] %v1017_v14  ;;  %1082 = vst [vmem:[%s2791_s24 + $0x168] sm:$0xff] %v1018_v51  ;;  %v1029_v14 = vmul.f32 %v4120_v46, %v4120_v46  ;;  %v1030_v51 = vmul.f32 %v4124_v55, %v4124_v55 }
 0x168   : > { %1083 = vst [vmem:[%s2791_s24 + $0x170] sm:$0xff] %v1019_v43  ;;  %1084 = vst [vmem:[%s2791_s24 + $0x178] sm:$0xff] %v1020_v41  ;;  %v1031_v43 = vmul.f32 %v4128_v34, %v4128_v34  ;;  %v1032_v41 = vmul.f32 %v4132_v26, %v4132_v26 }
 0x169   : > { %1085 = vst [vmem:[%s2791_s24 + $0x180] sm:$0xff] %v1021_v60  ;;  %1086 = vst [vmem:[%s2791_s24 + $0x188] sm:$0xff] %v1022_v33  ;;  %v1033_v60 = vmul.f32 %v4149_v7, %v4149_v7  ;;  %v1034_v33 = vmul.f32 %v4153_v54, %v4153_v54 }
 0x16a   : > { %1087 = vst [vmem:[%s2791_s24 + $0x190] sm:$0xff] %v1023_v57  ;;  %1088 = vst [vmem:[%s2791_s24 + $0x198] sm:$0xff] %v1024_v37  ;;  %v1035_v57 = vmul.f32 %v4157_v28, %v4157_v28  ;;  %v1036_v37 = vmul.f32 %v4161_v1, %v4161_v1 }
 0x16b   : > { %1089 = vst [vmem:[%s2791_s24 + $0x1a0] sm:$0xff] %v1025_v21  ;;  %1090 = vst [vmem:[%s2791_s24 + $0x1a8] sm:$0xff] %v1026_v47 }
 0x16c   : > { %1091 = vst [vmem:[%s2791_s24 + $0x1b0] sm:$0xff] %v1027_v61  ;;  %1092 = vst [vmem:[%s2791_s24 + $0x1b8] sm:$0xff] %v1028_v18 }
 0x16d   : > { %1093 = vst [vmem:[%s2791_s24 + $0x1c0] sm:$0xff] %v1029_v14  ;;  %1094 = vst [vmem:[%s2791_s24 + $0x1c8] sm:$0xff] %v1030_v51 }
 0x16e   : > { %1095 = vst [vmem:[%s2791_s24 + $0x1d0] sm:$0xff] %v1031_v43  ;;  %1096 = vst [vmem:[%s2791_s24 + $0x1d8] sm:$0xff] %v1032_v41 }
 0x16f   : > { %1097 = vst [vmem:[%s2791_s24 + $0x1e0] sm:$0xff] %v1033_v60  ;;  %1098 = vst [vmem:[%s2791_s24 + $0x1e8] sm:$0xff] %v1034_v33 }
 0x170   : > { %1099 = vst [vmem:[%s2791_s24 + $0x1f0] sm:$0xff] %v1035_v57  ;;  %1100 = vst [vmem:[%s2791_s24 + $0x1f8] sm:$0xff] %v1036_v37  ;;  %s2568_s24 = smov [#allocation11]  }
 0x171   : > { %vm4370_vm0 = vmpackc.low %vm1246_vm3, %vm1245_vm7  ;;  %s2421_s11 = sshll.u32 %s2568_s24, 4  ;;  %s2422_s11 = int_to_ptr.vmem [resolvable:$false] %s2421_s11 }
 0x172   : > { %vm4376_vm4 = vmpackc.low %vm1248_vm15, %vm1247_vm8  ;;  %s2423_s20 = scalar_lea.vmem %s2422_s11, 16384  ;;  %p2424_p0 = scmp.lt.s32.totalorder %s4356_s19, %s2422_s11 }
 0x173   : > { %p2425_p2 = scmp.lt.s32.totalorder %s2423_s20, %s2417_s21 }
 0x175   : > { %p2426_p4 = por %p2425_p2, %p2424_p0 }
 0x177   : > { %p2427_p5 = pnand %p2426_p4, %p2420_p10 }
 0x179   : > { %2430 = shalt.err (!%p2427_p5)
}
 0x17a   : > { %s2431_s23 = scalar_lea.hbm %s4354_s0, 8192  ;;  %s2435_s9 = scalar_lea.hbm %s4755_s5, 16384 }
 0x17b   : > { %p2432_p7 = scmp.ne.s32.totalorder %s4354_s0, %s2431_s23  ;;  %p2436_p3 = scmp.lt.u32.totalorder %s4354_s0, %s4755_s5 }
 0x17c   : > { %p2437_p6 = scmp.lt.u32.totalorder %s2435_s9, %s2431_s23  ;;  %p2439_p13 = scmp.lt.u32.totalorder %s2431_s23, %s4354_s0 }
 0x17d   : > { %p2433_p9 = pnand %p2432_p7, %p4928_p11 }
 0x17e   : > { %p2438_p12 = por %p2437_p6, %p2436_p3 }
 0x17f   : > { %p2434_p1 = pneg %p2433_p9 }
 0x180   : > { %p2440_p8 = por %p2439_p13, %p2438_p12 }
 0x182   : > { %p2441_p10 = pnand %p2440_p8, %p2434_p1 }
 0x184   : > { %2444 = shalt.err (!%p2441_p10)
}
 0x185   : > { %s4972_s29 = scalar_lea.sflag [#allocation10], %s3546_s22  ;;  %vm1311_vm1 = vmpackc.even %vm4376_vm4, %vm4370_vm0  ;;  %v4973_v61 = vmov 0   ;;  %v4974_v14 = vld [vmem:[#allocation37_spill] sm:$0xff]  ;;  %s4420_s18 = scalar_lea.vmem [#allocation14], %s3245_s12  ;;  %v4976_v43 = vld [vmem:[#allocation42_spill] sm:$0xff] }
 0x186   : > { %2103 = dma.vmem_to_hbm [thread:$0]  (%p4928_p11), %s4356_s19, 8192, %s4354_s0, %s4972_s29, %s4948_s16, %s4948_s16, %s2563_s30   ;;  %v1357_v18 = vsel %vm1311_vm1, 16843009, %v4973_v61  ;;  %vm1312_vm2 = vmpackc.low %vm1250_vm6, %vm1249_vm14  ;;  %vm1253_vm10 = vcmp.lt.f32.partialorder %v4974_v14, 5.0  ;;  %v4975_v51 = vld [vmem:[#allocation41_spill] sm:$0xff]  ;;  %vm1255_vm12 = vcmp.lt.f32.partialorder %v4976_v43, 5.0 }
 0x187   : > { %vm1254_vm13 = vcmp.lt.f32.partialorder %v4975_v51, 5.0  ;;  %1373 = vst [vmem:[%s4420_s18] sm:$0xff] %v1357_v18  ;;  %vm1313_vm9 = vmpackc.low %vm1252_vm5, %vm1251_vm11  ;;  %v4977_v41 = vld [vmem:[#allocation43_spill] sm:$0xff]  ;;  %v4978_v33 = vld [vmem:[#allocation45_spill] sm:$0xff]  ;;  %s1678_s19 = sshll.u32 %s4420_s18, 4  ;;  %s4518_s21 = scalar_lea.hbm %s4757_s7, %s3893_s28  ;;  %s4520_s19 = int_to_ptr.vmem [resolvable:$true] %s1678_s19 }
 0x188   : > { %vm1256_vm7 = vcmp.lt.f32.partialorder %v4977_v41, 5.0  ;;  %vm1314_vm3 = vmpackc.even %vm1313_vm9, %vm1312_vm2  ;;  %vm1257_vm15 = vcmp.lt.f32.partialorder %v4978_v33, 5.0  ;;  %v4979_v57 = vld [vmem:[#allocation46_spill] sm:$0xff]  ;;  %v4980_v37 = vld [vmem:[#allocation47_spill] sm:$0xff]  ;;  %s2445_s24 = scalar_lea.vmem %s4520_s19, 2048  ;;  %s2569_s11 = smov [#allocation14]  }
 0x189   : > { %v1358_v60 = vsel %vm1314_vm3, 16843009, %v4973_v61  ;;  %vm1315_vm8 = vmpackc.low %vm1254_vm13, %vm1253_vm10  ;;  %vm1258_vm0 = vcmp.lt.f32.partialorder %v4979_v57, 5.0  ;;  %vm1259_vm6 = vcmp.lt.f32.partialorder %v4980_v37, 5.0  ;;  %v4981_v21 = vld [vmem:[#allocation29_spill] sm:$0xff]  ;;  %v4982_v18 = vld [vmem:[#allocation30_spill] sm:$0xff]  ;;  %p2446_p0 = scmp.ne.s32.totalorder %s4520_s19, %s2445_s24 }
 0x18a   : > { %1374 = vst [vmem:[%s4420_s18 + $0x8] sm:$0xff] %v1358_v60  ;;  %vm1316_vm14 = vmpackc.low %vm1256_vm7, %vm1255_vm12  ;;  %vm1260_vm4 = vcmp.lt.f32.partialorder %v4981_v21, 5.0  ;;  %vm1261_vm1 = vcmp.lt.f32.partialorder %v4982_v18, 5.0  ;;  %v4983_v41 = vld [vmem:[#allocation31_spill] sm:$0xff]  ;;  %v4984_v33 = vld [vmem:[#allocation32_spill] sm:$0xff]  ;;  %vm1265_vm3 = vcmp.lt.f32.partialorder %v3802_v50, 5.0 }
 0x18b   : > { %vm1317_vm11 = vmpackc.even %vm1316_vm14, %vm1315_vm8  ;;  %vm1262_vm2 = vcmp.lt.f32.partialorder %v4983_v41, 5.0  ;;  %vm1263_vm13 = vcmp.lt.f32.partialorder %v4984_v33, 5.0  ;;  %v4985_v57 = vld [vmem:[#allocation33_spill] sm:$0xff]  ;;  %vm1266_vm8 = vcmp.lt.f32.partialorder %v3806_v5, 5.0  ;;  %vm1268_vm14 = vcmp.lt.f32.partialorder %v3854_v4, 5.0  ;;  %p2447_p2 = pnand %p2446_p0, %p4928_p11  ;;  %s2449_s20 = sshll.u32 %s2569_s11, 4  ;;  %s2450_s20 = int_to_ptr.vmem [resolvable:$false] %s2449_s20 }
 0x18c   : > { %v1359_v47 = vsel %vm1317_vm11, 16843009, %v4973_v61  ;;  %vm1318_vm5 = vmpackc.low %vm1258_vm0, %vm1257_vm15  ;;  %vm1264_vm9 = vcmp.lt.f32.partialorder %v4985_v57, 5.0  ;;  %vm1267_vm0 = vcmp.lt.f32.partialorder %v3810_v38, 5.0  ;;  %vm1269_vm11 = vcmp.lt.f32.partialorder %v3858_v59, 5.0  ;;  %s2451_s23 = scalar_lea.vmem %s2450_s20, 4096  ;;  %p2452_p5 = scmp.lt.s32.totalorder %s4520_s19, %s2450_s20 }
 0x18d   : > { %1375 = vst [vmem:[%s4420_s18 + $0x10] sm:$0xff] %v1359_v47  ;;  %vm1319_vm10 = vmpackc.low %vm1260_vm4, %vm1259_vm6  ;;  %p2448_p4 = pneg %p2447_p2  ;;  %p2453_p7 = scmp.lt.s32.totalorder %s2451_s23, %s2445_s24 }
 0x18e   : > { %vm1320_vm12 = vmpackc.even %vm1319_vm10, %vm1318_vm5  ;;  %vm1270_vm5 = vcmp.lt.f32.partialorder %v3862_v9, 5.0  ;;  %vm1272_vm10 = vcmp.lt.f32.partialorder %v3877_v24, 5.0 }
 0x18f   : > { %v1360_v60 = vsel %vm1320_vm12, 16843009, %v4973_v61  ;;  %vm1321_vm7 = vmpackc.low %vm1262_vm2, %vm1261_vm1  ;;  %vm1271_vm2 = vcmp.lt.f32.partialorder %v3866_v11, 5.0  ;;  %vm1273_vm12 = vcmp.lt.f32.partialorder %v3881_v13, 5.0  ;;  %p2454_p9 = por %p2453_p7, %p2452_p5 }
 0x190   : > { %1376 = vst [vmem:[%s4420_s18 + $0x18] sm:$0xff] %v1360_v60  ;;  %vm1322_vm15 = vmpackc.low %vm1264_vm9, %vm1263_vm13 }
 0x191   : > { %vm1323_vm6 = vmpackc.even %vm1322_vm15, %vm1321_vm7  ;;  %vm1274_vm7 = vcmp.lt.f32.partialorder %v3885_v20, 5.0  ;;  %vm1276_vm15 = vcmp.lt.f32.partialorder %v3909_v40, 5.0  ;;  %p2455_p1 = pnand %p2454_p9, %p2448_p4 }
 0x192   : > { %v1361_v47 = vsel %vm1323_vm6, 16843009, %v4973_v61  ;;  %vm1324_vm4 = vmpackc.low %vm1266_vm8, %vm1265_vm3  ;;  %vm1275_vm8 = vcmp.lt.f32.partialorder %v3889_v39, 5.0  ;;  %vm1277_vm6 = vcmp.lt.f32.partialorder %v3913_v53, 5.0 }
 0x193   : > { %1377 = vst [vmem:[%s4420_s18 + $0x20] sm:$0xff] %v1361_v47  ;;  %vm1325_vm1 = vmpackc.low %vm1268_vm14, %vm1267_vm0 }
 0x194   : > { %vm1326_vm13 = vmpackc.even %vm1325_vm1, %vm1324_vm4  ;;  %vm1278_vm4 = vcmp.lt.f32.partialorder %v3917_v29, 5.0  ;;  %vm1280_vm1 = vcmp.lt.f32.partialorder %v3938_v45, 5.0 }
 0x195   : > { %v1362_v60 = vsel %vm1326_vm13, 16843009, %v4973_v61  ;;  %vm1327_vm9 = vmpackc.low %vm1270_vm5, %vm1269_vm11  ;;  %vm1279_vm5 = vcmp.lt.f32.partialorder %v3934_v42, 5.0  ;;  %vm1281_vm13 = vcmp.lt.f32.partialorder %v3942_v17, 5.0 }
 0x196   : > { %1378 = vst [vmem:[%s4420_s18 + $0x28] sm:$0xff] %v1362_v60  ;;  %vm1328_vm3 = vmpackc.low %vm1272_vm10, %vm1271_vm2 }
 0x197   : > { %vm1329_vm0 = vmpackc.even %vm1328_vm3, %vm1327_vm9  ;;  %vm1282_vm9 = vcmp.lt.f32.partialorder %v3946_v49, 5.0  ;;  %vm1284_vm3 = vcmp.lt.f32.partialorder %v3968_v58, 5.0 }
 0x198   : > { %v1363_v47 = vsel %vm1329_vm0, 16843009, %v4973_v61  ;;  %vm1330_vm14 = vmpackc.low %vm1274_vm7, %vm1273_vm12  ;;  %vm1283_vm7 = vcmp.lt.f32.partialorder %v3964_v0, 5.0  ;;  %vm1285_vm0 = vcmp.lt.f32.partialorder %v3972_v19, 5.0 }
 0x199   : > { %1379 = vst [vmem:[%s4420_s18 + $0x30] sm:$0xff] %v1363_v47  ;;  %vm1331_vm11 = vmpackc.low %vm1276_vm15, %vm1275_vm8 }
 0x19a   : > { %vm1332_vm2 = vmpackc.even %vm1331_vm11, %vm1330_vm14  ;;  %vm1286_vm14 = vcmp.lt.f32.partialorder %v3976_v6, 5.0  ;;  %vm1288_vm11 = vcmp.lt.f32.partialorder %v4000_v27, 5.0 }
 0x19b   : > { %v1364_v60 = vsel %vm1332_vm2, 16843009, %v4973_v61  ;;  %vm1333_vm10 = vmpackc.low %vm1278_vm4, %vm1277_vm6  ;;  %vm1287_vm4 = vcmp.lt.f32.partialorder %v3996_v2, 5.0  ;;  %vm1289_vm2 = vcmp.lt.f32.partialorder %v4004_v30, 5.0 }
 0x19c   : > { %1380 = vst [vmem:[%s4420_s18 + $0x38] sm:$0xff] %v1364_v60  ;;  %vm1334_vm12 = vmpackc.low %vm1280_vm1, %vm1279_vm5 }
 0x19d   : > { %vm1335_vm8 = vmpackc.even %vm1334_vm12, %vm1333_vm10  ;;  %vm1290_vm10 = vcmp.lt.f32.partialorder %v4048_v35, 5.0  ;;  %vm1292_vm12 = vcmp.lt.f32.partialorder %v4056_v32, 5.0 }
 0x19e   : > { %v1365_v47 = vsel %vm1335_vm8, 16843009, %v4973_v61  ;;  %vm1336_vm15 = vmpackc.low %vm1282_vm9, %vm1281_vm13  ;;  %vm1291_vm9 = vcmp.lt.f32.partialorder %v4052_v44, 5.0  ;;  %vm1293_vm8 = vcmp.lt.f32.partialorder %v4060_v48, 5.0 }
 0x19f   : > { %1381 = vst [vmem:[%s4420_s18 + $0x40] sm:$0xff] %v1365_v47  ;;  %vm1337_vm6 = vmpackc.low %vm1284_vm3, %vm1283_vm7 }
 0x1a0   : > { %vm1338_vm5 = vmpackc.even %vm1337_vm6, %vm1336_vm15  ;;  %vm1294_vm15 = vcmp.lt.f32.partialorder %v4072_v31, 5.0  ;;  %vm1296_vm6 = vcmp.lt.f32.partialorder %v4080_v15, 5.0 }
 0x1a1   : > { %v1366_v60 = vsel %vm1338_vm5, 16843009, %v4973_v61  ;;  %vm1339_vm1 = vmpackc.low %vm1286_vm14, %vm1285_vm0  ;;  %vm1295_vm14 = vcmp.lt.f32.partialorder %v4076_v63, 5.0  ;;  %vm1297_vm5 = vcmp.lt.f32.partialorder %v4084_v22, 5.0 }
 0x1a2   : > { %1382 = vst [vmem:[%s4420_s18 + $0x48] sm:$0xff] %v1366_v60  ;;  %vm1340_vm13 = vmpackc.low %vm1288_vm11, %vm1287_vm4 }
 0x1a3   : > { %vm1341_vm7 = vmpackc.even %vm1340_vm13, %vm1339_vm1  ;;  %vm1298_vm1 = vcmp.lt.f32.partialorder %v4103_v52, 5.0  ;;  %vm1300_vm13 = vcmp.lt.f32.partialorder %v4111_v36, 5.0 }
 0x1a4   : > { %v1367_v47 = vsel %vm1341_vm7, 16843009, %v4973_v61  ;;  %vm1342_vm3 = vmpackc.low %vm1290_vm10, %vm1289_vm2  ;;  %vm1299_vm10 = vcmp.lt.f32.partialorder %v4107_v23, 5.0  ;;  %vm1301_vm7 = vcmp.lt.f32.partialorder %v4120_v46, 5.0 }
 0x1a5   : > { %1383 = vst [vmem:[%s4420_s18 + $0x50] sm:$0xff] %v1367_v47  ;;  %vm1343_vm0 = vmpackc.low %vm1292_vm12, %vm1291_vm9 }
 0x1a6   : > { %vm1344_vm4 = vmpackc.even %vm1343_vm0, %vm1342_vm3  ;;  %vm1302_vm3 = vcmp.lt.f32.partialorder %v4124_v55, 5.0  ;;  %vm1304_vm0 = vcmp.lt.f32.partialorder %v4132_v26, 5.0 }
 0x1a7   : > { %v1368_v60 = vsel %vm1344_vm4, 16843009, %v4973_v61  ;;  %vm1345_vm11 = vmpackc.low %vm1294_vm15, %vm1293_vm8  ;;  %vm1303_vm15 = vcmp.lt.f32.partialorder %v4128_v34, 5.0  ;;  %vm1305_vm4 = vcmp.lt.f32.partialorder %v4149_v7, 5.0 }
 0x1a8   : > { %1384 = vst [vmem:[%s4420_s18 + $0x58] sm:$0xff] %v1368_v60  ;;  %vm1346_vm2 = vmpackc.low %vm1296_vm6, %vm1295_vm14 }
 0x1a9   : > { %vm1347_vm9 = vmpackc.even %vm1346_vm2, %vm1345_vm11  ;;  %vm1306_vm11 = vcmp.lt.f32.partialorder %v4153_v54, 5.0  ;;  %vm1308_vm2 = vcmp.lt.f32.partialorder %v4161_v1, 5.0 }
 0x1aa   : > { %v1369_v47 = vsel %vm1347_vm9, 16843009, %v4973_v61  ;;  %vm1348_vm12 = vmpackc.low %vm1298_vm1, %vm1297_vm5  ;;  %vm1307_vm1 = vcmp.lt.f32.partialorder %v4157_v28, 5.0  ;;  %vm1389_vm9 = vcmp.eq.f32.partialorder %v3599_v56, 3.0 }
 0x1ab   : > { %1385 = vst [vmem:[%s4420_s18 + $0x60] sm:$0xff] %v1369_v47  ;;  %vm1349_vm8 = vmpackc.low %vm1300_vm13, %vm1299_vm10 }
 0x1ac   : > { %vm1350_vm14 = vmpackc.even %vm1349_vm8, %vm1348_vm12  ;;  %vm1390_vm12 = vcmp.eq.f32.partialorder %v3625_v62, 3.0  ;;  %vm1392_vm8 = vcmp.eq.f32.partialorder %v3633_v3, 3.0 }
 0x1ad   : > { %v1370_v60 = vsel %vm1350_vm14, 16843009, %v4973_v61  ;;  %vm1351_vm6 = vmpackc.low %vm1302_vm3, %vm1301_vm7  ;;  %vm1391_vm3 = vcmp.eq.f32.partialorder %v3629_v10, 3.0  ;;  %vm1393_vm14 = vcmp.eq.f32.partialorder %v3637_v12, 3.0 }
 0x1ae   : > { %1386 = vst [vmem:[%s4420_s18 + $0x68] sm:$0xff] %v1370_v60  ;;  %vm1352_vm5 = vmpackc.low %vm1304_vm0, %vm1303_vm15 }
 0x1af   : > { %vm1353_vm10 = vmpackc.even %vm1352_vm5, %vm1351_vm6  ;;  %vm1394_vm6 = vcmp.eq.f32.partialorder %v3655_v16, 3.0  ;;  %vm1396_vm5 = vcmp.eq.f32.partialorder %v3663_v8, 3.0 }
 0x1b0   : > { %v1371_v47 = vsel %vm1353_vm10, 16843009, %v4973_v61  ;;  %vm1354_vm13 = vmpackc.low %vm1306_vm11, %vm1305_vm4  ;;  %vm1395_vm11 = vcmp.eq.f32.partialorder %v3659_v25, 3.0 }
 0x1b1   : > { %1387 = vst [vmem:[%s4420_s18 + $0x70] sm:$0xff] %v1371_v47  ;;  %vm1355_vm7 = vmpackc.low %vm1308_vm2, %vm1307_vm1 }
 0x1b2   : > { %vm1356_vm15 = vmpackc.even %vm1355_vm7, %vm1354_vm13 }
 0x1b3   : > { %v1372_v56 = vsel %vm1356_vm15, 16843009, %v4973_v61  ;;  %vm4523_vm0 = vmpackc.low %vm1390_vm12, %vm1389_vm9 }
 0x1b4   : > { %1388 = vst [vmem:[%s4420_s18 + $0x78] sm:$0xff] %v1372_v56  ;;  %vm4530_vm4 = vmpackc.low %vm1392_vm8, %vm1391_vm3 }
 0x1b5   : > { %vm1455_vm1 = vmpackc.even %vm4530_vm4, %vm4523_vm0 }
 0x1b6   : > { %2458 = shalt.err (!%p2455_p1)
}
 0x1b7   : > { %s2459_s15 = scalar_lea.hbm %s4518_s21, 2048  ;;  %s2463_s14 = scalar_lea.hbm %s4757_s7, 4096 }
 0x1b8   : > { %p2460_p3 = scmp.ne.s32.totalorder %s4518_s21, %s2459_s15  ;;  %p2464_p13 = scmp.lt.u32.totalorder %s4518_s21, %s4757_s7 }
 0x1b9   : > { %p2465_p8 = scmp.lt.u32.totalorder %s2463_s14, %s2459_s15  ;;  %p2467_p0 = scmp.lt.u32.totalorder %s2459_s15, %s4518_s21 }
 0x1ba   : > { %p2461_p6 = pnand %p2460_p3, %p4928_p11 }
 0x1bb   : > { %p2466_p10 = por %p2465_p8, %p2464_p13 }
 0x1bc   : > { %p2462_p12 = pneg %p2461_p6 }
 0x1bd   : > { %p2468_p2 = por %p2467_p0, %p2466_p10 }
 0x1bf   : > { %p2469_p4 = pnand %p2468_p2, %p2462_p12 }
 0x1c1   : > { %2472 = shalt.err (!%p2469_p4)
}
 0x1c2   : > { %s4990_s18 = scalar_lea.sflag [#allocation13], %s3546_s22  ;;  %v1501_v3 = vsel %vm1455_vm1, 16843009, %v4973_v61  ;;  %vm1456_vm2 = vmpackc.low %vm1394_vm6, %vm1393_vm14  ;;  %vm1397_vm10 = vcmp.eq.f32.partialorder %v4974_v14, 3.0  ;;  %vm1398_vm13 = vcmp.eq.f32.partialorder %v4975_v51, 3.0  ;;  %s4579_s22 = scalar_lea.vmem [#allocation15], %s3245_s12 }
 0x1c3   : > { %2105 = dma.vmem_to_hbm [thread:$0]  (%p4928_p11), %s4520_s19, 2048, %s4518_s21, %s4990_s18, %s4948_s16, %s4948_s16, %s2563_s30   ;;  %vm1457_vm9 = vmpackc.low %vm1396_vm5, %vm1395_vm11  ;;  %vm1399_vm12 = vcmp.eq.f32.partialorder %v4976_v43, 3.0  ;;  %v4991_v12 = vld [vmem:[#allocation43_spill] sm:$0xff]  ;;  %v4992_v14 = vld [vmem:[#allocation45_spill] sm:$0xff]  ;;  %vm1403_vm6 = vcmp.eq.f32.partialorder %v4980_v37, 3.0  ;;  %vm1404_vm4 = vcmp.eq.f32.partialorder %v4981_v21, 3.0 }
 0x1c4   : > { %1517 = vst [vmem:[%s4579_s22] sm:$0xff] %v1501_v3  ;;  %vm1400_vm7 = vcmp.eq.f32.partialorder %v4991_v12, 3.0  ;;  %vm1458_vm3 = vmpackc.even %vm1457_vm9, %vm1456_vm2  ;;  %vm1401_vm15 = vcmp.eq.f32.partialorder %v4992_v14, 3.0  ;;  %v4993_v51 = vld [vmem:[#allocation46_spill] sm:$0xff]  ;;  %vm1405_vm1 = vcmp.eq.f32.partialorder %v4982_v18, 3.0  ;;  %vm1406_vm2 = vcmp.eq.f32.partialorder %v4983_v41, 3.0  ;;  %s1694_s12 = sshll.u32 %s4579_s22, 4  ;;  %s4673_s0 = scalar_lea.hbm %s4758_s8, %s3893_s28  ;;  %s4675_s12 = int_to_ptr.vmem [resolvable:$true] %s1694_s12 }
 0x1c5   : > { %v1502_v16 = vsel %vm1458_vm3, 16843009, %v4973_v61  ;;  %vm1459_vm8 = vmpackc.low %vm1398_vm13, %vm1397_vm10  ;;  %vm1402_vm0 = vcmp.eq.f32.partialorder %v4993_v51, 3.0  ;;  %vm1407_vm13 = vcmp.eq.f32.partialorder %v4984_v33, 3.0  ;;  %vm1408_vm9 = vcmp.eq.f32.partialorder %v4985_v57, 3.0  ;;  %s1569_s21 = scalar_lea.sflag [#allocation16], %s2722_s25 }
 0x1c6   : > { %1518 = vst [vmem:[%s4579_s22 + $0x8] sm:$0xff] %v1502_v16  ;;  %vm1460_vm14 = vmpackc.low %vm1400_vm7, %vm1399_vm12  ;;  %vm1409_vm3 = vcmp.eq.f32.partialorder %v3802_v50, 3.0  ;;  %s2473_s24 = scalar_lea.vmem %s4675_s12, 2048  ;;  %s2570_s11 = smov [#allocation15]  }
 0x1c7   : > { %vm1461_vm11 = vmpackc.even %vm1460_vm14, %vm1459_vm8  ;;  %vm1410_vm8 = vcmp.eq.f32.partialorder %v3806_v5, 3.0  ;;  %vm1412_vm14 = vcmp.eq.f32.partialorder %v3854_v4, 3.0  ;;  %p2474_p5 = scmp.ne.s32.totalorder %s4675_s12, %s2473_s24  ;;  %s2477_s20 = sshll.u32 %s2570_s11, 4  ;;  %s2478_s20 = int_to_ptr.vmem [resolvable:$false] %s2477_s20 }
 0x1c8   : > { %v1503_v25 = vsel %vm1461_vm11, 16843009, %v4973_v61  ;;  %vm1462_vm5 = vmpackc.low %vm1402_vm0, %vm1401_vm15  ;;  %vm1411_vm0 = vcmp.eq.f32.partialorder %v3810_v38, 3.0  ;;  %vm1413_vm11 = vcmp.eq.f32.partialorder %v3858_v59, 3.0  ;;  %s2479_s23 = scalar_lea.vmem %s2478_s20, 4096  ;;  %p2480_p1 = scmp.lt.s32.totalorder %s4675_s12, %s2478_s20 }
 0x1c9   : > { %1519 = vst [vmem:[%s4579_s22 + $0x10] sm:$0xff] %v1503_v25  ;;  %vm1463_vm10 = vmpackc.low %vm1404_vm4, %vm1403_vm6  ;;  %p2475_p7 = pnand %p2474_p5, %p4928_p11  ;;  %p2481_p3 = scmp.lt.s32.totalorder %s2479_s23, %s2473_s24 }
 0x1ca   : > { %vm1464_vm12 = vmpackc.even %vm1463_vm10, %vm1462_vm5  ;;  %vm1414_vm5 = vcmp.eq.f32.partialorder %v3862_v9, 3.0  ;;  %vm1416_vm10 = vcmp.eq.f32.partialorder %v3877_v24, 3.0 }
 0x1cb   : > { %v1504_v8 = vsel %vm1464_vm12, 16843009, %v4973_v61  ;;  %vm1465_vm7 = vmpackc.low %vm1406_vm2, %vm1405_vm1  ;;  %vm1415_vm2 = vcmp.eq.f32.partialorder %v3866_v11, 3.0  ;;  %vm1417_vm12 = vcmp.eq.f32.partialorder %v3881_v13, 3.0  ;;  %p2476_p9 = pneg %p2475_p7  ;;  %p2482_p6 = por %p2481_p3, %p2480_p1 }
 0x1cc   : > { %1520 = vst [vmem:[%s4579_s22 + $0x18] sm:$0xff] %v1504_v8  ;;  %vm1466_vm15 = vmpackc.low %vm1408_vm9, %vm1407_vm13 }
 0x1cd   : > { %vm1467_vm6 = vmpackc.even %vm1466_vm15, %vm1465_vm7  ;;  %vm1418_vm7 = vcmp.eq.f32.partialorder %v3885_v20, 3.0  ;;  %vm1420_vm15 = vcmp.eq.f32.partialorder %v3909_v40, 3.0  ;;  %p2483_p12 = pnand %p2482_p6, %p2476_p9 }
 0x1ce   : > { %v1505_v43 = vsel %vm1467_vm6, 16843009, %v4973_v61  ;;  %vm1468_vm4 = vmpackc.low %vm1410_vm8, %vm1409_vm3  ;;  %vm1419_vm8 = vcmp.eq.f32.partialorder %v3889_v39, 3.0  ;;  %vm1421_vm6 = vcmp.eq.f32.partialorder %v3913_v53, 3.0 }
 0x1cf   : > { %1521 = vst [vmem:[%s4579_s22 + $0x20] sm:$0xff] %v1505_v43  ;;  %vm1469_vm1 = vmpackc.low %vm1412_vm14, %vm1411_vm0 }
 0x1d0   : > { %vm1470_vm13 = vmpackc.even %vm1469_vm1, %vm1468_vm4  ;;  %vm1422_vm4 = vcmp.eq.f32.partialorder %v3917_v29, 3.0  ;;  %vm1424_vm1 = vcmp.eq.f32.partialorder %v3938_v45, 3.0 }
 0x1d1   : > { %v1506_v50 = vsel %vm1470_vm13, 16843009, %v4973_v61  ;;  %vm1471_vm9 = vmpackc.low %vm1414_vm5, %vm1413_vm11  ;;  %vm1423_vm5 = vcmp.eq.f32.partialorder %v3934_v42, 3.0  ;;  %vm1425_vm13 = vcmp.eq.f32.partialorder %v3942_v17, 3.0 }
 0x1d2   : > { %1522 = vst [vmem:[%s4579_s22 + $0x28] sm:$0xff] %v1506_v50  ;;  %vm1472_vm3 = vmpackc.low %vm1416_vm10, %vm1415_vm2 }
 0x1d3   : > { %vm1473_vm0 = vmpackc.even %vm1472_vm3, %vm1471_vm9  ;;  %vm1426_vm9 = vcmp.eq.f32.partialorder %v3946_v49, 3.0  ;;  %vm1428_vm3 = vcmp.eq.f32.partialorder %v3968_v58, 3.0 }
 0x1d4   : > { %v1507_v5 = vsel %vm1473_vm0, 16843009, %v4973_v61  ;;  %vm1474_vm14 = vmpackc.low %vm1418_vm7, %vm1417_vm12  ;;  %vm1427_vm7 = vcmp.eq.f32.partialorder %v3964_v0, 3.0  ;;  %vm1429_vm0 = vcmp.eq.f32.partialorder %v3972_v19, 3.0 }
 0x1d5   : > { %1523 = vst [vmem:[%s4579_s22 + $0x30] sm:$0xff] %v1507_v5  ;;  %vm1475_vm11 = vmpackc.low %vm1420_vm15, %vm1419_vm8 }
 0x1d6   : > { %vm1476_vm2 = vmpackc.even %vm1475_vm11, %vm1474_vm14  ;;  %vm1430_vm14 = vcmp.eq.f32.partialorder %v3976_v6, 3.0  ;;  %vm1432_vm11 = vcmp.eq.f32.partialorder %v4000_v27, 3.0 }
 0x1d7   : > { %v1508_v38 = vsel %vm1476_vm2, 16843009, %v4973_v61  ;;  %vm1477_vm10 = vmpackc.low %vm1422_vm4, %vm1421_vm6  ;;  %vm1431_vm4 = vcmp.eq.f32.partialorder %v3996_v2, 3.0  ;;  %vm1433_vm2 = vcmp.eq.f32.partialorder %v4004_v30, 3.0 }
 0x1d8   : > { %1524 = vst [vmem:[%s4579_s22 + $0x38] sm:$0xff] %v1508_v38  ;;  %vm1478_vm12 = vmpackc.low %vm1424_vm1, %vm1423_vm5 }
 0x1d9   : > { %vm1479_vm8 = vmpackc.even %vm1478_vm12, %vm1477_vm10  ;;  %vm1434_vm10 = vcmp.eq.f32.partialorder %v4048_v35, 3.0  ;;  %vm1436_vm12 = vcmp.eq.f32.partialorder %v4056_v32, 3.0 }
 0x1da   : > { %v1509_v4 = vsel %vm1479_vm8, 16843009, %v4973_v61  ;;  %vm1480_vm15 = vmpackc.low %vm1426_vm9, %vm1425_vm13  ;;  %vm1435_vm9 = vcmp.eq.f32.partialorder %v4052_v44, 3.0  ;;  %vm1437_vm8 = vcmp.eq.f32.partialorder %v4060_v48, 3.0 }
 0x1db   : > { %1525 = vst [vmem:[%s4579_s22 + $0x40] sm:$0xff] %v1509_v4  ;;  %vm1481_vm6 = vmpackc.low %vm1428_vm3, %vm1427_vm7 }
 0x1dc   : > { %vm1482_vm5 = vmpackc.even %vm1481_vm6, %vm1480_vm15  ;;  %vm1438_vm15 = vcmp.eq.f32.partialorder %v4072_v31, 3.0  ;;  %vm1440_vm6 = vcmp.eq.f32.partialorder %v4080_v15, 3.0 }
 0x1dd   : > { %v1510_v59 = vsel %vm1482_vm5, 16843009, %v4973_v61  ;;  %vm1483_vm1 = vmpackc.low %vm1430_vm14, %vm1429_vm0  ;;  %vm1439_vm14 = vcmp.eq.f32.partialorder %v4076_v63, 3.0  ;;  %vm1441_vm5 = vcmp.eq.f32.partialorder %v4084_v22, 3.0 }
 0x1de   : > { %1526 = vst [vmem:[%s4579_s22 + $0x48] sm:$0xff] %v1510_v59  ;;  %vm1484_vm13 = vmpackc.low %vm1432_vm11, %vm1431_vm4 }
 0x1df   : > { %vm1485_vm7 = vmpackc.even %vm1484_vm13, %vm1483_vm1  ;;  %vm1442_vm1 = vcmp.eq.f32.partialorder %v4103_v52, 3.0  ;;  %vm1444_vm13 = vcmp.eq.f32.partialorder %v4111_v36, 3.0 }
 0x1e0   : > { %v1511_v9 = vsel %vm1485_vm7, 16843009, %v4973_v61  ;;  %vm1486_vm3 = vmpackc.low %vm1434_vm10, %vm1433_vm2  ;;  %vm1443_vm10 = vcmp.eq.f32.partialorder %v4107_v23, 3.0  ;;  %vm1445_vm7 = vcmp.eq.f32.partialorder %v4120_v46, 3.0 }
 0x1e1   : > { %1527 = vst [vmem:[%s4579_s22 + $0x50] sm:$0xff] %v1511_v9  ;;  %vm1487_vm0 = vmpackc.low %vm1436_vm12, %vm1435_vm9 }
 0x1e2   : > { %vm1488_vm4 = vmpackc.even %vm1487_vm0, %vm1486_vm3  ;;  %vm1446_vm3 = vcmp.eq.f32.partialorder %v4124_v55, 3.0  ;;  %vm1448_vm0 = vcmp.eq.f32.partialorder %v4132_v26, 3.0 }
 0x1e3   : > { %v1512_v11 = vsel %vm1488_vm4, 16843009, %v4973_v61  ;;  %vm1489_vm11 = vmpackc.low %vm1438_vm15, %vm1437_vm8  ;;  %vm1447_vm15 = vcmp.eq.f32.partialorder %v4128_v34, 3.0  ;;  %vm1449_vm4 = vcmp.eq.f32.partialorder %v4149_v7, 3.0 }
 0x1e4   : > { %1528 = vst [vmem:[%s4579_s22 + $0x58] sm:$0xff] %v1512_v11  ;;  %vm1490_vm2 = vmpackc.low %vm1440_vm6, %vm1439_vm14 }
 0x1e5   : > { %vm1491_vm9 = vmpackc.even %vm1490_vm2, %vm1489_vm11  ;;  %vm1450_vm11 = vcmp.eq.f32.partialorder %v4153_v54, 3.0  ;;  %vm1452_vm2 = vcmp.eq.f32.partialorder %v4161_v1, 3.0 }
 0x1e6   : > { %v1513_v24 = vsel %vm1491_vm9, 16843009, %v4973_v61  ;;  %vm1492_vm12 = vmpackc.low %vm1442_vm1, %vm1441_vm5  ;;  %vm1451_vm1 = vcmp.eq.f32.partialorder %v4157_v28, 3.0 }
 0x1e7   : > { %1529 = vst [vmem:[%s4579_s22 + $0x60] sm:$0xff] %v1513_v24  ;;  %vm1493_vm8 = vmpackc.low %vm1444_vm13, %vm1443_vm10 }
 0x1e8   : > { %vm1494_vm14 = vmpackc.even %vm1493_vm8, %vm1492_vm12 }
 0x1e9   : > { %v1514_v36 = vsel %vm1494_vm14, 16843009, %v4973_v61  ;;  %vm1495_vm6 = vmpackc.low %vm1446_vm3, %vm1445_vm7 }
 0x1ea   : > { %1530 = vst [vmem:[%s4579_s22 + $0x68] sm:$0xff] %v1514_v36  ;;  %vm1496_vm5 = vmpackc.low %vm1448_vm0, %vm1447_vm15 }
 0x1eb   : > { %vm1497_vm10 = vmpackc.even %vm1496_vm5, %vm1495_vm6 }
 0x1ec   : > { %v1515_v34 = vsel %vm1497_vm10, 16843009, %v4973_v61  ;;  %vm1498_vm13 = vmpackc.low %vm1450_vm11, %vm1449_vm4 }
 0x1ed   : > { %1531 = vst [vmem:[%s4579_s22 + $0x70] sm:$0xff] %v1515_v34  ;;  %vm1499_vm9 = vmpackc.low %vm1452_vm2, %vm1451_vm1 }
 0x1ee   : > { %vm1500_vm12 = vmpackc.even %vm1499_vm9, %vm1498_vm13 }
 0x1ef   : > { %v1516_v1 = vsel %vm1500_vm12, 16843009, %v4973_v61 }
 0x1f0   : > { %1532 = vst [vmem:[%s4579_s22 + $0x78] sm:$0xff] %v1516_v1 }
 0x1f1   : > { %2486 = shalt.err (!%p2483_p12)
}
 0x1f2   : > { %s2487_s28 = scalar_lea.hbm %s4673_s0, 2048  ;;  %s2491_s9 = scalar_lea.hbm %s4758_s8, 4096 }
 0x1f3   : > { %p2488_p13 = scmp.ne.s32.totalorder %s4673_s0, %s2487_s28  ;;  %p2492_p0 = scmp.lt.u32.totalorder %s4673_s0, %s4758_s8 }
 0x1f4   : > { %p2493_p2 = scmp.lt.u32.totalorder %s2491_s9, %s2487_s28  ;;  %p2495_p5 = scmp.lt.u32.totalorder %s2487_s28, %s4673_s0 }
 0x1f5   : > { %p2489_p8 = pnand %p2488_p13, %p4928_p11 }
 0x1f6   : > { %p2494_p4 = por %p2493_p2, %p2492_p0 }
 0x1f7   : > { %p2490_p10 = pneg %p2489_p8 }
 0x1f8   : > { %p2496_p7 = por %p2495_p5, %p2494_p4 }
 0x1fa   : > { %p2497_p9 = pnand %p2496_p7, %p2490_p10 }
 0x1fc   : > { %2500 = shalt.err (!%p2497_p9)
}
 0x1fd   : > { %2106 = dma.vmem_to_hbm [thread:$0]  (%p4928_p11), %s4675_s12, 2048, %s4673_s0, %s1569_s21, %s4948_s16, %s4948_s16, %s2563_s30  }
 0x1fe PF: > { %s4994_s29 = sld [smem:[#allocation28_spill]]  ;;  %s4995_s18 = sld [smem:[#allocation25_spill]] }
 0x1ff   : > { %s1709_s22 = sand.u32 1, %s2543_s27  }
 0x200   : > { %s1710_s17 = scalar_lea.sflag [#allocation4], %s1709_s22 }
 0x204   : > { %p4996_p1 = scmp.ne.s32.totalorder %s4994_s29, 0  ;;  %p4997_p3 = scmp.ge.s32.totalorder %s4995_s18, 2 }
 0x206   : > { %p4711_p6 = pnand %p4997_p3, %p4996_p1 }
 0x208   : > { %2522 = dma.done.wait (!%p4711_p6), %s1710_s17, 8192  }
 0x209   : > { %2524 = vsyncadd (!%p4711_p6), %s1710_s17, 4294959104  ;;  %s4999_s25 = sadd.s32 4294967294, %s4995_s18  }
 0x20a   : > { %s1718_s30 = sand.u32 1, %s4999_s25  }
 0x20b   : > { %s1719_s16 = scalar_lea.sflag [#allocation7], %s1718_s30 }
 0x20c   : > { %2526 = dma.done.wait (!%p4711_p6), %s1719_s16, 16384  }
 0x20d   : > { %2528 = vsyncadd (!%p4711_p6), %s1719_s16, 4294950912  ;;  %s1737_s27 = scalar_lea.sflag [#allocation10], %s1718_s30 }
 0x20e   : > { %2530 = dma.done.wait (!%p4711_p6), %s1737_s27, 16384  }
 0x20f   : > { %2532 = vsyncadd (!%p4711_p6), %s1737_s27, 4294950912  ;;  %s1755_s12 = scalar_lea.sflag [#allocation13], %s1718_s30 }
 0x210   : > { %2534 = dma.done.wait (!%p4711_p6), %s1755_s12, 4096  }
 0x211   : > { %2536 = vsyncadd (!%p4711_p6), %s1755_s12, 4294963200  ;;  %s1773_s10 = scalar_lea.sflag [#allocation16], %s1709_s22 }
 0x212   : > { %2538 = dma.done.wait (!%p4711_p6), %s1773_s10, 2048  }
 0x213   : > { %2540 = vsyncadd (!%p4711_p6), %s1773_s10, 4294965248  ;;  %s5000_s30 = sld [smem:[#allocation26_spill]]  ;;  %s5001_s27 = sld [smem:[#allocation23_spill]] }
 0x214   : > { %s5002_s28 = sld [smem:[#allocation24_spill]]  ;;  %s5003_s29 = sld [smem:[#allocation27_spill]] }
 0x219   : > { %p34_p11 = scmp.ge.s32.totalorder %s5000_s30, 4  }
 0x21b   :  { %36 = sbr.rel (!%p34_p11) target bundleno = 15 (0xf), region = 182 }
 0x222   :  { %1778 = vsyncpa [#allocation3], 1 }
 0x223   :  { %1780 = vsyncpa [#allocation3 + $0x1], 1 }
 0x224   :  { %1781 = vsyncpa [#allocation4], 1 }
 0x225   :  { %1783 = vsyncpa [#allocation4 + $0x1], 1 }
 0x226   :  { %1784 = vsyncpa [#allocation7], 1 }
 0x227   :  { %1786 = vsyncpa [#allocation7 + $0x1], 1 }
 0x228   :  { %1787 = vsyncpa [#allocation10], 1 }
 0x229   :  { %1789 = vsyncpa [#allocation10 + $0x1], 1 }
 0x22a   :  { %1790 = vsyncpa [#allocation13], 1 }
 0x22b   :  { %1792 = vsyncpa [#allocation13 + $0x1], 1 }
 0x22c   :  { %1793 = vsyncpa [#allocation16], 1 }
 0x22d   :  { %1795 = vsyncpa [#allocation16 + $0x1], 1 }

</bundles_post_ra>
